<compile_context>
chip_gen: v6e
topology: v6e:2x2x1
jax: 0.10.0
libtpu: 0.0.40
codegen_flags: <defaults>
</compile_context>

<pallas_src>
import functools

import jax
import jax.numpy as jnp
from jax.experimental import pallas as pl
from jax.experimental.pallas import tpu as pltpu


_SEG_MAX_IDENTITY = float(jnp.finfo(jnp.float32).min)   # finite sentinel (not -inf)
_GRAPH_BLOCK = 8                                        # graphs per accumulator update (sublane aligned)


def _mlp_ptcldpred_kernel(
    num_graphs,                          # static (bound via functools.partial)
    blk_lo_ref, blk_hi_ref,              # scalar-prefetch (SMEM): graph-block range per node tile
    x_ref, batch_ref,
    wt_ref, bt_ref,                      # transfer Linear (ReLU after; its BN folded forward into conv0)
    w1_ref, c1_ref,                      # conv0: Linear with transfer-BN + conv0-BN folded, then ReLU
    w2_ref, c2_ref,                      # conv1: Linear with BN folded
    wp_ref, bp_ref,                      # graph_pred_linear
    out_ref,                             # (B_pad, CLS_pad) f32, resident across grid
    acc_ref,                             # scratch (B_pad, OUT_pad) f32 segment-max accumulator
):
    pid = pl.program_id(0)
    last = pl.num_programs(0) - 1

    @pl.when(pid == 0)
    def _init():
        acc_ref[...] = jnp.full_like(acc_ref, _SEG_MAX_IDENTITY)

    # ---- node MLP on this tile (bf16 matmuls, f32 accumulation) ----
    x = x_ref[...]                                                    # (TILE_N, IN_P) bf16
    h = jnp.dot(x, wt_ref[...], preferred_element_type=jnp.float32) + bt_ref[...]
    h = jnp.maximum(h, 0.0)                                           # transfer ReLU (BN folded forward)

    h = jnp.dot(h.astype(jnp.bfloat16), w1_ref[...],
                preferred_element_type=jnp.float32) + c1_ref[...]     # conv0 (both BNs folded)
    h = jnp.maximum(h, 0.0)

    h = jnp.dot(h.astype(jnp.bfloat16), w2_ref[...],
                preferred_element_type=jnp.float32) + c2_ref[...]     # (TILE_N, OUT_P) f32

    # ---- global_max_pool: update only the graph blocks this tile touches ----
    seg = batch_ref[...]                                              # (TILE_N, 1) int32, -1 = pad row
    blk_lo = blk_lo_ref[pid]
    blk_hi = blk_hi_ref[pid]

    def _pool_block(b, carry):
        g0 = pl.multiple_of(b * _GRAPH_BLOCK, _GRAPH_BLOCK)
        # 2-D masked passes (one (TILE_N, OUT_P) slab live at a time, no 3-D temp).
        rows = []
        for j in range(_GRAPH_BLOCK):
            masked = jnp.where(seg == g0 + j, h, _SEG_MAX_IDENTITY)   # (TILE_N, OUT_P)
            rows.append(jnp.max(masked, axis=0, keepdims=True))       # (1, OUT_P)
        blk_max = jnp.concatenate(rows, axis=0)                       # (GRAPH_BLOCK, OUT_P)
        cur = acc_ref[pl.ds(g0, _GRAPH_BLOCK), :]
        acc_ref[pl.ds(g0, _GRAPH_BLOCK), :] = jnp.maximum(cur, blk_max)
        return carry

    jax.lax.fori_loop(blk_lo, blk_hi, _pool_block, jnp.int32(0))

    # ---- final projection, once, lane-dense store ----
    @pl.when(pid == last)
    def _finalize():
        emb = acc_ref[...]
        # Zero padded graph rows so the sentinel never reaches the projection
        # (keeps the padded output rows finite).
        row_id = jax.lax.broadcasted_iota(jnp.int32, emb.shape, 0)
        emb = jnp.where(row_id < num_graphs, emb, 0.0)
        out_ref[...] = (
            jnp.dot(emb, wp_ref[...], preferred_element_type=jnp.float32)
            + bp_ref[...]
        )


def _round_up(v, m):
    return (v + m - 1) // m * m


def _fold_bn(gamma, beta, mean, var, eps=1e-5):
    scale = gamma / jnp.sqrt(var + eps)
    shift = beta - mean * scale
    return scale, shift


def _pad2d(a, rows, cols, dtype=None):
    a = jnp.pad(a, ((0, rows - a.shape[0]), (0, cols - a.shape[1])))
    return a if dtype is None else a.astype(dtype)


def _pad_row(v, cols):
    v = v.reshape(1, -1).astype(jnp.float32)
    return jnp.pad(v, ((0, 0), (0, cols - v.shape[1])))


def mlp_ptcldpred_forward(x, batch, params, num_graphs, *, tile_n=2048):
    """x: [N, input_dim] float, batch: [N] int graph ids in [0, num_graphs). Eval-mode forward."""
    n_nodes, input_dim = x.shape
    hid_dim = params["wt"].shape[1]
    out_dim = params["w2"].shape[1]
    num_class = params["wp"].shape[1]

    # Lane/sublane padding (128-lane channels, 8-row graph accumulator blocks).
    in_p = _round_up(input_dim, 128)
    hid_p = _round_up(hid_dim, 128)
    out_p = _round_up(out_dim, 128)
    cls_p = _round_up(num_class, 128)
    b_p = _round_up(num_graphs, _GRAPH_BLOCK)
    n_blocks = b_p // _GRAPH_BLOCK

    # Node tile: 2048 rows default amortizes the ~0.35 us per-grid-step overhead;
    # VMEM impact is small (bf16 x tile at 2048x128 = 512 KiB per buffer).
    tile = min(_round_up(tile_n, 8), _round_up(n_nodes, 8))
    n_p = _round_up(n_nodes, tile)
    n_steps = n_p // tile

    # ---- fold eval-mode BatchNorm (f32, JAX-side) ----
    st, sht = _fold_bn(*params["bn_t"])      # transfer BN (after ReLU) -> fold FORWARD into conv0
    s1, sh1 = _fold_bn(*params["bn_1"])      # conv0 BN -> fold into W1/b1
    s2, sh2 = _fold_bn(*params["bn_2"])      # conv1 BN -> fold into W2/b2
    w1f = params["w1"] * s1[None, :]
    c1 = params["b1"] * s1 + sh1
    w1ff = st[:, None] * w1f                 # transfer BN scale folded forward
    c1f = sht @ w1f + c1                     # transfer BN shift folded forward
    w2f = params["w2"] * s2[None, :]
    c2 = params["b2"] * s2 + sh2

    # ---- pad + cast operands ----
    x_p = _pad2d(x.astype(jnp.float32), n_p, in_p).astype(jnp.bfloat16)
    bids = batch.astype(jnp.int32)
    pad_len = n_p - n_nodes
    batch_p = jnp.pad(bids, (0, pad_len), constant_values=-1).reshape(n_p, 1)

    # ---- per-tile graph-block range for the pooling loop (scalar prefetch) ----
    ids_min = jnp.pad(bids, (0, pad_len), constant_values=2 ** 30).reshape(n_steps, tile)
    ids_max = jnp.pad(bids, (0, pad_len), constant_values=-1).reshape(n_steps, tile)
    blk_lo = jnp.clip(jnp.min(ids_min, axis=1) // _GRAPH_BLOCK, 0, n_blocks).astype(jnp.int32)
    blk_hi = jnp.clip(jnp.max(ids_max, axis=1) // _GRAPH_BLOCK + 1, 0, n_blocks).astype(jnp.int32)

    args = (
        blk_lo, blk_hi,
        x_p, batch_p,
        _pad2d(params["wt"], in_p, hid_p, jnp.bfloat16), _pad_row(params["bt"], hid_p),
        _pad2d(w1ff, hid_p, hid_p, jnp.bfloat16), _pad_row(c1f, hid_p),
        _pad2d(w2f, hid_p, out_p, jnp.bfloat16), _pad_row(c2, out_p),
        _pad2d(params["wp"], out_p, cls_p, jnp.float32), _pad_row(params["bp"], cls_p),
    )

    def resident(shape):
        return pl.BlockSpec(shape, lambda i, lo, hi: (0, 0))

    in_specs = [
        pl.BlockSpec((tile, in_p), lambda i, lo, hi: (i, 0)),   # x: streamed per node tile
        pl.BlockSpec((tile, 1), lambda i, lo, hi: (i, 0)),      # batch ids per tile
        resident((in_p, hid_p)), resident((1, hid_p)),
        resident((hid_p, hid_p)), resident((1, hid_p)),
        resident((hid_p, out_p)), resident((1, out_p)),
        resident((out_p, cls_p)), resident((1, cls_p)),
    ]
    out_specs = pl.BlockSpec((b_p, cls_p), lambda i, lo, hi: (0, 0))

    flops = (2 * n_nodes * (input_dim * hid_dim + hid_dim * hid_dim + hid_dim * out_dim)
             + 2 * num_graphs * out_dim * num_class)
    bytes_accessed = (n_p * in_p * 2 + n_p * 4
                      + (in_p * hid_p + hid_p * hid_p + hid_p * out_p) * 2
                      + out_p * cls_p * 4 + b_p * cls_p * 4)
    cost = pl.CostEstimate(flops=int(flops), transcendentals=0,
                           bytes_accessed=int(bytes_accessed))

    # VMEM budget: resident weights + double-buffered node tiles + h / masked temps
    # + accumulator + output block.  Clamp well under the v7x 64 MiB physical window.
    weight_bytes = (in_p * hid_p + hid_p * hid_p + hid_p * out_p) * 2 + out_p * cls_p * 4
    vmem_est = (2 * weight_bytes
                + 2 * (tile * in_p * 2 + tile * 4)
                + 2 * b_p * cls_p * 4
                + b_p * out_p * 4
                + 6 * tile * max(hid_p, out_p) * 4)
    vmem_limit = int(min(max(vmem_est + (4 << 20), 16 << 20), 40 << 20))

    kernel = functools.partial(_mlp_ptcldpred_kernel, num_graphs)

    out_padded = pl.pallas_call(
        kernel,
        out_shape=jax.ShapeDtypeStruct((b_p, cls_p), jnp.float32),
        grid_spec=pltpu.PrefetchScalarGridSpec(
            num_scalar_prefetch=2,
            grid=(n_steps,),
            in_specs=in_specs,
            out_specs=out_specs,
            scratch_shapes=[pltpu.VMEM((b_p, out_p), jnp.float32)],
        ),
        compiler_params=pltpu.CompilerParams(
            # Node axis reduces into the resident accumulator -> "arbitrary".
            dimension_semantics=("arbitrary",),
            vmem_limit_bytes=vmem_limit,
        ),
        cost_estimate=cost,
    )(*args)

    return out_padded[:num_graphs, :num_class]


def reference_forward(x, batch, params, num_graphs):
    """Pure-JAX f32 reference (eval semantics) for a tolerance check."""
    st, sht = _fold_bn(*params["bn_t"])
    s1, sh1 = _fold_bn(*params["bn_1"])
    s2, sh2 = _fold_bn(*params["bn_2"])
    h = jnp.maximum(x @ params["wt"] + params["bt"], 0.0) * st + sht
    h = jnp.maximum((h @ params["w1"] + params["b1"]) * s1 + sh1, 0.0)
    h = (h @ params["w2"] + params["b2"]) * s2 + sh2
    emb = jnp.full((num_graphs, h.shape[1]), jnp.finfo(jnp.float32).min, jnp.float32)
    emb = emb.at[batch].max(h)
    return emb @ params["wp"] + params["bp"]


def init_params(key, input_dim, hid_dim, out_dim, num_class):
    ks = jax.random.split(key, 20)

    def lin(kw, kb, fan_in, fan_out):
        w = jax.random.normal(kw, (fan_in, fan_out), jnp.float32) * 0.1
        b = jax.random.normal(kb, (fan_out,), jnp.float32) * 0.05
        return w, b

    def bn(kg, kb, km, kv, dim):
        gamma = 1.0 + 0.1 * jax.random.normal(kg, (dim,), jnp.float32)
        beta = 0.05 * jax.random.normal(kb, (dim,), jnp.float32)
        mean = 0.1 * jax.random.normal(km, (dim,), jnp.float32)
        var = 0.5 + jnp.abs(jax.random.normal(kv, (dim,), jnp.float32)) * 0.5
        return gamma, beta, mean, var

    wt, bt = lin(ks[0], ks[1], input_dim, hid_dim)
    w1, b1 = lin(ks[2], ks[3], hid_dim, hid_dim)
    w2, b2 = lin(ks[4], ks[5], hid_dim, out_dim)
    wp, bp = lin(ks[6], ks[7], out_dim, num_class)

    return {
        "wt": wt, "bt": bt, "bn_t": bn(ks[8], ks[9], ks[10], ks[11], hid_dim),
        "w1": w1, "b1": b1, "bn_1": bn(ks[12], ks[13], ks[14], ks[15], hid_dim),
        "w2": w2, "b2": b2, "bn_2": bn(ks[16], ks[17], ks[18], ks[19], out_dim),
        "wp": wp, "bp": bp,
    }


if __name__ == "__main__":
    # Small shapes consistent with the module's forward:
    input_dim, hid_dim, num_class = 16, 32, 8
    out_dim = hid_dim                       # default out_dim = hid_dim
    num_graphs, nodes_per_graph = 4, 16
    n_nodes = num_graphs * nodes_per_graph  # 64 point-cloud nodes total

    key = jax.random.PRNGKey(0)
    kx, kp = jax.random.split(key)
    x = jax.random.normal(kx, (n_nodes, input_dim), jnp.float32)
    batch = jnp.repeat(jnp.arange(num_graphs, dtype=jnp.int32), nodes_per_graph)

    params = init_params(kp, input_dim, hid_dim, out_dim, num_class)

    graph_pred = mlp_ptcldpred_forward(x, batch, params, num_graphs)
    jax.block_until_ready(graph_pred)

    assert graph_pred.shape == (num_graphs, num_class)
    assert bool(jnp.all(jnp.isfinite(graph_pred)))

    ref = reference_forward(x, batch, params, num_graphs)
    max_err = float(jnp.max(jnp.abs(graph_pred - ref)))
    assert max_err < 0.1, f"mismatch vs f32 reference: {max_err}"

    print("KERNEL_OK")
</pallas_src>

<mosaic_0001>
module attributes {stable_mosaic.version = 11 : i64} {
  func.func @_mlp_ptcldpred_kernel(%arg0: i32, %arg1: memref<1xi32, #tpu.memory_space<smem>>, %arg2: memref<1xi32, #tpu.memory_space<smem>>, %arg3: memref<64x128xbf16, #tpu.memory_space<vmem>>, %arg4: memref<64x1xi32, #tpu.memory_space<vmem>>, %arg5: memref<128x128xbf16, #tpu.memory_space<vmem>>, %arg6: memref<1x128xf32, #tpu.memory_space<vmem>>, %arg7: memref<128x128xbf16, #tpu.memory_space<vmem>>, %arg8: memref<1x128xf32, #tpu.memory_space<vmem>>, %arg9: memref<128x128xbf16, #tpu.memory_space<vmem>>, %arg10: memref<1x128xf32, #tpu.memory_space<vmem>>, %arg11: memref<128x128xf32, #tpu.memory_space<vmem>>, %arg12: memref<1x128xf32, #tpu.memory_space<vmem>>, %arg13: memref<8x128xf32, #tpu.memory_space<vmem>>, %arg14: memref<8x128xf32, #tpu.memory_space<vmem>>) attributes {dimension_semantics = [#tpu.dimension_semantics<arbitrary>], iteration_bounds = array<i64: 1>, scalar_prefetch = 2 : i64, scratch_operands = 1 : i64, tpu.core_type = #tpu.core_type<tc>, window_params = [{transform_indices = @transform_0, window_bounds = array<i64: 64, 128>}, {transform_indices = @transform_1, window_bounds = array<i64: 64, 1>}, {pipeline_mode = #tpu.pipeline_mode<synchronous>, transform_indices = @transform_2, window_bounds = array<i64: 128, 128>}, {pipeline_mode = #tpu.pipeline_mode<synchronous>, transform_indices = @transform_3, window_bounds = array<i64: 1, 128>}, {pipeline_mode = #tpu.pipeline_mode<synchronous>, transform_indices = @transform_4, window_bounds = array<i64: 128, 128>}, {pipeline_mode = #tpu.pipeline_mode<synchronous>, transform_indices = @transform_5, window_bounds = array<i64: 1, 128>}, {pipeline_mode = #tpu.pipeline_mode<synchronous>, transform_indices = @transform_6, window_bounds = array<i64: 128, 128>}, {pipeline_mode = #tpu.pipeline_mode<synchronous>, transform_indices = @transform_7, window_bounds = array<i64: 1, 128>}, {pipeline_mode = #tpu.pipeline_mode<synchronous>, transform_indices = @transform_8, window_bounds = array<i64: 128, 128>}, {pipeline_mode = #tpu.pipeline_mode<synchronous>, transform_indices = @transform_9, window_bounds = array<i64: 1, 128>}, {pipeline_mode = #tpu.pipeline_mode<synchronous>, transform_indices = @transform_10, window_bounds = array<i64: 8, 128>}]} {
    %c0_i32 = arith.constant 0 : i32
    %0 = arith.cmpi eq, %arg0, %c0_i32 : i32
    %1 = arith.extui %0 : i1 to i32
    %c0_i32_0 = arith.constant 0 : i32
    %2 = arith.cmpi ne, %1, %c0_i32_0 : i32
    scf.if %2 {
      %cst_23 = arith.constant -3.40282347E+38 : f32
      %35 = vector.broadcast %cst_23 : f32 to vector<8x128xf32>
      %c0_24 = arith.constant 0 : index
      %c0_25 = arith.constant 0 : index
      %36 = vector.load %arg14[%c0_24, %c0_25] : memref<8x128xf32, #tpu.memory_space<vmem>>, vector<8x128xf32>
      tpu.vector_store %arg14[%c0_24, %c0_25], %35 {strides = array<i32>} : memref<8x128xf32, #tpu.memory_space<vmem>>, vector<8x128xf32>,
    } else {
    }
    %c0 = arith.constant 0 : index
    %c0_1 = arith.constant 0 : index
    %3 = vector.load %arg3[%c0, %c0_1] : memref<64x128xbf16, #tpu.memory_space<vmem>>, vector<64x128xbf16>
    %c0_2 = arith.constant 0 : index
    %c0_3 = arith.constant 0 : index
    %4 = vector.load %arg5[%c0_2, %c0_3] : memref<128x128xbf16, #tpu.memory_space<vmem>>, vector<128x128xbf16>
    %cst = arith.constant dense<0.000000e+00> : vector<64x128xf32>
    %5 = tpu.matmul %3, %4, %cst {dimension_numbers = #tpu.dot_dimension_numbers<[1], [0], [0], [1], [0, 0, 1, 1], [], []>} : vector<64x128xbf16>, vector<128x128xbf16>, vector<64x128xf32> -> vector<64x128xf32>
    %c0_4 = arith.constant 0 : index
    %c0_5 = arith.constant 0 : index
    %6 = vector.load %arg6[%c0_4, %c0_5] : memref<1x128xf32, #tpu.memory_space<vmem>>, vector<1x128xf32>
    %7 = vector.broadcast %6 : vector<1x128xf32> to vector<64x128xf32>
    %8 = arith.addf %5, %7 : vector<64x128xf32>
    %cst_6 = arith.constant 0.000000e+00 : f32
    %9 = vector.broadcast %cst_6 : f32 to vector<64x128xf32>
    %10 = arith.maximumf %8, %9 : vector<64x128xf32>
    %11 = arith.truncf %10 : vector<64x128xf32> to vector<64x128xbf16>
    %c0_7 = arith.constant 0 : index
    %c0_8 = arith.constant 0 : index
    %12 = vector.load %arg7[%c0_7, %c0_8] : memref<128x128xbf16, #tpu.memory_space<vmem>>, vector<128x128xbf16>
    %cst_9 = arith.constant dense<0.000000e+00> : vector<64x128xf32>
    %13 = tpu.matmul %11, %12, %cst_9 {dimension_numbers = #tpu.dot_dimension_numbers<[1], [0], [0], [1], [0, 0, 1, 1], [], []>} : vector<64x128xbf16>, vector<128x128xbf16>, vector<64x128xf32> -> vector<64x128xf32>
    %c0_10 = arith.constant 0 : index
    %c0_11 = arith.constant 0 : index
    %14 = vector.load %arg8[%c0_10, %c0_11] : memref<1x128xf32, #tpu.memory_space<vmem>>, vector<1x128xf32>
    %15 = vector.broadcast %14 : vector<1x128xf32> to vector<64x128xf32>
    %16 = arith.addf %13, %15 : vector<64x128xf32>
    %cst_12 = arith.constant 0.000000e+00 : f32
    %17 = vector.broadcast %cst_12 : f32 to vector<64x128xf32>
    %18 = arith.maximumf %16, %17 : vector<64x128xf32>
    %19 = arith.truncf %18 : vector<64x128xf32> to vector<64x128xbf16>
    %c0_13 = arith.constant 0 : index
    %c0_14 = arith.constant 0 : index
    %20 = vector.load %arg9[%c0_13, %c0_14] : memref<128x128xbf16, #tpu.memory_space<vmem>>, vector<128x128xbf16>
    %cst_15 = arith.constant dense<0.000000e+00> : vector<64x128xf32>
    %21 = tpu.matmul %19, %20, %cst_15 {dimension_numbers = #tpu.dot_dimension_numbers<[1], [0], [0], [1], [0, 0, 1, 1], [], []>} : vector<64x128xbf16>, vector<128x128xbf16>, vector<64x128xf32> -> vector<64x128xf32>
    %c0_16 = arith.constant 0 : index
    %c0_17 = arith.constant 0 : index
    %22 = vector.load %arg10[%c0_16, %c0_17] : memref<1x128xf32, #tpu.memory_space<vmem>>, vector<1x128xf32>
    %23 = vector.broadcast %22 : vector<1x128xf32> to vector<64x128xf32>
    %24 = arith.addf %21, %23 : vector<64x128xf32>
    %c0_18 = arith.constant 0 : index
    %c0_19 = arith.constant 0 : index
    %25 = vector.load %arg4[%c0_18, %c0_19] : memref<64x1xi32, #tpu.memory_space<vmem>>, vector<64x1xi32>
    %26 = arith.index_cast %arg0 : i32 to index
    %27 = memref.load %arg1[%26] : memref<1xi32, #tpu.memory_space<smem>>
    %28 = arith.index_cast %arg0 : i32 to index
    %29 = memref.load %arg2[%28] : memref<1xi32, #tpu.memory_space<smem>>
    %c0_i32_20 = arith.constant 0 : i32
    %30 = arith.subi %29, %27 : i32
    %31 = arith.addi %27, %30 : i32
    %c1_i32 = arith.constant 1 : i32
    scf.for %arg15 = %27 to %31 step %c1_i32  : i32 {
      %c8_i32 = arith.constant 8 : i32
      %35 = arith.muli %arg15, %c8_i32 : i32
      %36 = tpu.assume_multiple %35, 8 : i32
      %c0_i32_23 = arith.constant 0 : i32
      %37 = arith.addi %36, %c0_i32_23 : i32
      %38 = vector.broadcast %37 : i32 to vector<64x1xi32>
      %39 = arith.cmpi eq, %25, %38 : vector<64x1xi32>
      %cst_24 = arith.constant -3.40282347E+38 : f32
      %40 = vector.shape_cast %39 : vector<64x1xi1> to vector<64x1xi1>
      %41 = vector.broadcast %40 : vector<64x1xi1> to vector<64x128xi1>
      %42 = vector.broadcast %cst_24 : f32 to vector<64x128xf32>
      %43 = arith.select %41, %24, %42 : vector<64x128xi1>, vector<64x128xf32>
      %cst_25 = arith.constant dense<0xFF800000> : vector<128xf32>
      %44 = vector.multi_reduction <maximumf>, %43, %cst_25 [0] : vector<64x128xf32> to vector<128xf32>
      %45 = vector.shape_cast %44 : vector<128xf32> to vector<1x128xf32>
      %c1_i32_26 = arith.constant 1 : i32
      %46 = arith.addi %36, %c1_i32_26 : i32
      %47 = vector.broadcast %46 : i32 to vector<64x1xi32>
      %48 = arith.cmpi eq, %25, %47 : vector<64x1xi32>
      %cst_27 = arith.constant -3.40282347E+38 : f32
      %49 = vector.shape_cast %48 : vector<64x1xi1> to vector<64x1xi1>
      %50 = vector.broadcast %49 : vector<64x1xi1> to vector<64x128xi1>
      %51 = vector.broadcast %cst_27 : f32 to vector<64x128xf32>
      %52 = arith.select %50, %24, %51 : vector<64x128xi1>, vector<64x128xf32>
      %cst_28 = arith.constant dense<0xFF800000> : vector<128xf32>
      %53 = vector.multi_reduction <maximumf>, %52, %cst_28 [0] : vector<64x128xf32> to vector<128xf32>
      %54 = vector.shape_cast %53 : vector<128xf32> to vector<1x128xf32>
      %c2_i32 = arith.constant 2 : i32
      %55 = arith.addi %36, %c2_i32 : i32
      %56 = vector.broadcast %55 : i32 to vector<64x1xi32>
      %57 = arith.cmpi eq, %25, %56 : vector<64x1xi32>
      %cst_29 = arith.constant -3.40282347E+38 : f32
      %58 = vector.shape_cast %57 : vector<64x1xi1> to vector<64x1xi1>
      %59 = vector.broadcast %58 : vector<64x1xi1> to vector<64x128xi1>
      %60 = vector.broadcast %cst_29 : f32 to vector<64x128xf32>
      %61 = arith.select %59, %24, %60 : vector<64x128xi1>, vector<64x128xf32>
      %cst_30 = arith.constant dense<0xFF800000> : vector<128xf32>
      %62 = vector.multi_reduction <maximumf>, %61, %cst_30 [0] : vector<64x128xf32> to vector<128xf32>
      %63 = vector.shape_cast %62 : vector<128xf32> to vector<1x128xf32>
      %c3_i32 = arith.constant 3 : i32
      %64 = arith.addi %36, %c3_i32 : i32
      %65 = vector.broadcast %64 : i32 to vector<64x1xi32>
      %66 = arith.cmpi eq, %25, %65 : vector<64x1xi32>
      %cst_31 = arith.constant -3.40282347E+38 : f32
      %67 = vector.shape_cast %66 : vector<64x1xi1> to vector<64x1xi1>
      %68 = vector.broadcast %67 : vector<64x1xi1> to vector<64x128xi1>
      %69 = vector.broadcast %cst_31 : f32 to vector<64x128xf32>
      %70 = arith.select %68, %24, %69 : vector<64x128xi1>, vector<64x128xf32>
      %cst_32 = arith.constant dense<0xFF800000> : vector<128xf32>
      %71 = vector.multi_reduction <maximumf>, %70, %cst_32 [0] : vector<64x128xf32> to vector<128xf32>
      %72 = vector.shape_cast %71 : vector<128xf32> to vector<1x128xf32>
      %c4_i32 = arith.constant 4 : i32
      %73 = arith.addi %36, %c4_i32 : i32
      %74 = vector.broadcast %73 : i32 to vector<64x1xi32>
      %75 = arith.cmpi eq, %25, %74 : vector<64x1xi32>
      %cst_33 = arith.constant -3.40282347E+38 : f32
      %76 = vector.shape_cast %75 : vector<64x1xi1> to vector<64x1xi1>
      %77 = vector.broadcast %76 : vector<64x1xi1> to vector<64x128xi1>
      %78 = vector.broadcast %cst_33 : f32 to vector<64x128xf32>
      %79 = arith.select %77, %24, %78 : vector<64x128xi1>, vector<64x128xf32>
      %cst_34 = arith.constant dense<0xFF800000> : vector<128xf32>
      %80 = vector.multi_reduction <maximumf>, %79, %cst_34 [0] : vector<64x128xf32> to vector<128xf32>
      %81 = vector.shape_cast %80 : vector<128xf32> to vector<1x128xf32>
      %c5_i32 = arith.constant 5 : i32
      %82 = arith.addi %36, %c5_i32 : i32
      %83 = vector.broadcast %82 : i32 to vector<64x1xi32>
      %84 = arith.cmpi eq, %25, %83 : vector<64x1xi32>
      %cst_35 = arith.constant -3.40282347E+38 : f32
      %85 = vector.shape_cast %84 : vector<64x1xi1> to vector<64x1xi1>
      %86 = vector.broadcast %85 : vector<64x1xi1> to vector<64x128xi1>
      %87 = vector.broadcast %cst_35 : f32 to vector<64x128xf32>
      %88 = arith.select %86, %24, %87 : vector<64x128xi1>, vector<64x128xf32>
      %cst_36 = arith.constant dense<0xFF800000> : vector<128xf32>
      %89 = vector.multi_reduction <maximumf>, %88, %cst_36 [0] : vector<64x128xf32> to vector<128xf32>
      %90 = vector.shape_cast %89 : vector<128xf32> to vector<1x128xf32>
      %c6_i32 = arith.constant 6 : i32
      %91 = arith.addi %36, %c6_i32 : i32
      %92 = vector.broadcast %91 : i32 to vector<64x1xi32>
      %93 = arith.cmpi eq, %25, %92 : vector<64x1xi32>
      %cst_37 = arith.constant -3.40282347E+38 : f32
      %94 = vector.shape_cast %93 : vector<64x1xi1> to vector<64x1xi1>
      %95 = vector.broadcast %94 : vector<64x1xi1> to vector<64x128xi1>
      %96 = vector.broadcast %cst_37 : f32 to vector<64x128xf32>
      %97 = arith.select %95, %24, %96 : vector<64x128xi1>, vector<64x128xf32>
      %cst_38 = arith.constant dense<0xFF800000> : vector<128xf32>
      %98 = vector.multi_reduction <maximumf>, %97, %cst_38 [0] : vector<64x128xf32> to vector<128xf32>
      %99 = vector.shape_cast %98 : vector<128xf32> to vector<1x128xf32>
      %c7_i32 = arith.constant 7 : i32
      %100 = arith.addi %36, %c7_i32 : i32
      %101 = vector.broadcast %100 : i32 to vector<64x1xi32>
      %102 = arith.cmpi eq, %25, %101 : vector<64x1xi32>
      %cst_39 = arith.constant -3.40282347E+38 : f32
      %103 = vector.shape_cast %102 : vector<64x1xi1> to vector<64x1xi1>
      %104 = vector.broadcast %103 : vector<64x1xi1> to vector<64x128xi1>
      %105 = vector.broadcast %cst_39 : f32 to vector<64x128xf32>
      %106 = arith.select %104, %24, %105 : vector<64x128xi1>, vector<64x128xf32>
      %cst_40 = arith.constant dense<0xFF800000> : vector<128xf32>
      %107 = vector.multi_reduction <maximumf>, %106, %cst_40 [0] : vector<64x128xf32> to vector<128xf32>
      %108 = vector.shape_cast %107 : vector<128xf32> to vector<1x128xf32>
      %109 = tpu.concatenate %45, %54, %63, %72, %81, %90, %99, %108 in 0 : vector<1x128xf32>, vector<1x128xf32>, vector<1x128xf32>, vector<1x128xf32>, vector<1x128xf32>, vector<1x128xf32>, vector<1x128xf32>, vector<1x128xf32> -> vector<8x128xf32>
      %110 = arith.index_cast %36 : i32 to index
      %c0_41 = arith.constant 0 : index
      %111 = vector.load %arg14[%110, %c0_41] : memref<8x128xf32, #tpu.memory_space<vmem>>, vector<8x128xf32>
      %112 = arith.maximumf %111, %109 : vector<8x128xf32>
      %113 = arith.index_cast %36 : i32 to index
      %c0_42 = arith.constant 0 : index
      %114 = vector.load %arg14[%113, %c0_42] : memref<8x128xf32, #tpu.memory_space<vmem>>, vector<8x128xf32>
      tpu.vector_store %arg14[%113, %c0_42], %112 {strides = array<i32>} : memref<8x128xf32, #tpu.memory_space<vmem>>, vector<8x128xf32>,
    }
    %c0_i32_21 = arith.constant 0 : i32
    %32 = arith.cmpi eq, %arg0, %c0_i32_21 : i32
    %33 = arith.extui %32 : i1 to i32
    %c0_i32_22 = arith.constant 0 : i32
    %34 = arith.cmpi ne, %33, %c0_i32_22 : i32
    scf.if %34 {
      %c0_23 = arith.constant 0 : index
      %c0_24 = arith.constant 0 : index
      %35 = vector.load %arg14[%c0_23, %c0_24] : memref<8x128xf32, #tpu.memory_space<vmem>>, vector<8x128xf32>
      %36 = tpu.iota {dimensions = array<i32: 0>} : vector<8x128xi32>
      %c4_i32 = arith.constant 4 : i32
      %37 = vector.broadcast %c4_i32 : i32 to vector<8x128xi32>
      %38 = arith.cmpi slt, %36, %37 : vector<8x128xi32>
      %cst_25 = arith.constant 0.000000e+00 : f32
      %39 = vector.broadcast %cst_25 : f32 to vector<8x128xf32>
      %40 = arith.select %38, %35, %39 : vector<8x128xi1>, vector<8x128xf32>
      %c0_26 = arith.constant 0 : index
      %c0_27 = arith.constant 0 : index
      %41 = vector.load %arg11[%c0_26, %c0_27] : memref<128x128xf32, #tpu.memory_space<vmem>>, vector<128x128xf32>
      %cst_28 = arith.constant dense<0.000000e+00> : vector<8x128xf32>
      %42 = tpu.matmul %40, %41, %cst_28 {dimension_numbers = #tpu.dot_dimension_numbers<[1], [0], [0], [1], [0, 0, 1, 1], [], []>} : vector<8x128xf32>, vector<128x128xf32>, vector<8x128xf32> -> vector<8x128xf32>
      %c0_29 = arith.constant 0 : index
      %c0_30 = arith.constant 0 : index
      %43 = vector.load %arg12[%c0_29, %c0_30] : memref<1x128xf32, #tpu.memory_space<vmem>>, vector<1x128xf32>
      %44 = vector.broadcast %43 : vector<1x128xf32> to vector<8x128xf32>
      %45 = arith.addf %42, %44 : vector<8x128xf32>
      %c0_31 = arith.constant 0 : index
      %c0_32 = arith.constant 0 : index
      %46 = vector.load %arg13[%c0_31, %c0_32] : memref<8x128xf32, #tpu.memory_space<vmem>>, vector<8x128xf32>
      tpu.vector_store %arg13[%c0_31, %c0_32], %45 {strides = array<i32>} : memref<8x128xf32, #tpu.memory_space<vmem>>, vector<8x128xf32>,
    } else {
    }
    return
  }
  func.func @transform_0(%arg0: i32, %arg1: memref<1xi32, #tpu.memory_space<smem>>, %arg2: memref<1xi32, #tpu.memory_space<smem>>) -> (i32, i32) {
    %c0_i32 = arith.constant 0 : i32
    %c0_i32_0 = arith.constant 0 : i32
    return %arg0, %c0_i32 : i32, i32
  }
  func.func @transform_1(%arg0: i32, %arg1: memref<1xi32, #tpu.memory_space<smem>>, %arg2: memref<1xi32, #tpu.memory_space<smem>>) -> (i32, i32) {
    %c0_i32 = arith.constant 0 : i32
    %c0_i32_0 = arith.constant 0 : i32
    return %arg0, %c0_i32 : i32, i32
  }
  func.func @transform_2(%arg0: i32, %arg1: memref<1xi32, #tpu.memory_space<smem>>, %arg2: memref<1xi32, #tpu.memory_space<smem>>) -> (i32, i32) {
    %c0_i32 = arith.constant 0 : i32
    %c0_i32_0 = arith.constant 0 : i32
    %c0_i32_1 = arith.constant 0 : i32
    return %c0_i32, %c0_i32_0 : i32, i32
  }
  func.func @transform_3(%arg0: i32, %arg1: memref<1xi32, #tpu.memory_space<smem>>, %arg2: memref<1xi32, #tpu.memory_space<smem>>) -> (i32, i32) {
    %c0_i32 = arith.constant 0 : i32
    %c0_i32_0 = arith.constant 0 : i32
    %c0_i32_1 = arith.constant 0 : i32
    return %c0_i32, %c0_i32_0 : i32, i32
  }
  func.func @transform_4(%arg0: i32, %arg1: memref<1xi32, #tpu.memory_space<smem>>, %arg2: memref<1xi32, #tpu.memory_space<smem>>) -> (i32, i32) {
    %c0_i32 = arith.constant 0 : i32
    %c0_i32_0 = arith.constant 0 : i32
    %c0_i32_1 = arith.constant 0 : i32
    return %c0_i32, %c0_i32_0 : i32, i32
  }
  func.func @transform_5(%arg0: i32, %arg1: memref<1xi32, #tpu.memory_space<smem>>, %arg2: memref<1xi32, #tpu.memory_space<smem>>) -> (i32, i32) {
    %c0_i32 = arith.constant 0 : i32
    %c0_i32_0 = arith.constant 0 : i32
    %c0_i32_1 = arith.constant 0 : i32
    return %c0_i32, %c0_i32_0 : i32, i32
  }
  func.func @transform_6(%arg0: i32, %arg1: memref<1xi32, #tpu.memory_space<smem>>, %arg2: memref<1xi32, #tpu.memory_space<smem>>) -> (i32, i32) {
    %c0_i32 = arith.constant 0 : i32
    %c0_i32_0 = arith.constant 0 : i32
    %c0_i32_1 = arith.constant 0 : i32
    return %c0_i32, %c0_i32_0 : i32, i32
  }
  func.func @transform_7(%arg0: i32, %arg1: memref<1xi32, #tpu.memory_space<smem>>, %arg2: memref<1xi32, #tpu.memory_space<smem>>) -> (i32, i32) {
    %c0_i32 = arith.constant 0 : i32
    %c0_i32_0 = arith.constant 0 : i32
    %c0_i32_1 = arith.constant 0 : i32
    return %c0_i32, %c0_i32_0 : i32, i32
  }
  func.func @transform_8(%arg0: i32, %arg1: memref<1xi32, #tpu.memory_space<smem>>, %arg2: memref<1xi32, #tpu.memory_space<smem>>) -> (i32, i32) {
    %c0_i32 = arith.constant 0 : i32
    %c0_i32_0 = arith.constant 0 : i32
    %c0_i32_1 = arith.constant 0 : i32
    return %c0_i32, %c0_i32_0 : i32, i32
  }
  func.func @transform_9(%arg0: i32, %arg1: memref<1xi32, #tpu.memory_space<smem>>, %arg2: memref<1xi32, #tpu.memory_space<smem>>) -> (i32, i32) {
    %c0_i32 = arith.constant 0 : i32
    %c0_i32_0 = arith.constant 0 : i32
    %c0_i32_1 = arith.constant 0 : i32
    return %c0_i32, %c0_i32_0 : i32, i32
  }
  func.func @transform_10(%arg0: i32, %arg1: memref<1xi32, #tpu.memory_space<smem>>, %arg2: memref<1xi32, #tpu.memory_space<smem>>) -> (i32, i32) {
    %c0_i32 = arith.constant 0 : i32
    %c0_i32_0 = arith.constant 0 : i32
    %c0_i32_1 = arith.constant 0 : i32
    return %c0_i32, %c0_i32_0 : i32, i32
  }
}

</mosaic_0001>

<bundles_post_ra>
// kernel: tpu_custom_call.1
= control target key start
LH: loop header
LB: loop body
LE: loop exit
PB: predicated region body
PF: predicated region fallthrough
CT: control target
= control target key end

     0   :  { %19 = vsyncpa [#allocation7], 0  ;;  %s2070_s0 = inlined_call_operand.<no memory space> [shape: s32[1], index: 0, kind: input, shape index: {}]   ;;  %s2071_s1 = inlined_call_operand.<no memory space> [shape: s32[1], index: 1, kind: input, shape index: {}]   ;;  %s2072_s2 = inlined_call_operand.hbm [shape: bf16[64,128], index: 2, kind: input, shape index: {}]   ;;  %s2073_s3 = inlined_call_operand.vmem [shape: s32[64,1], index: 3, kind: input, shape index: {}]   ;;  %s2074_s4 = inlined_call_operand.vmem [shape: bf16[128,128], index: 4, kind: input, shape index: {}]   ;;  %s2075_s5 = inlined_call_operand.vmem [shape: f32[1,128], index: 5, kind: input, shape index: {}]   ;;  %s2076_s6 = inlined_call_operand.hbm [shape: bf16[128,128], index: 6, kind: input, shape index: {}]   ;;  %s2077_s7 = inlined_call_operand.vmem [shape: f32[1,128], index: 7, kind: input, shape index: {}]   ;;  %s2078_s8 = inlined_call_operand.hbm [shape: bf16[128,128], index: 8, kind: input, shape index: {}]   ;;  %s2079_s9 = inlined_call_operand.vmem [shape: f32[1,128], index: 9, kind: input, shape index: {}]   ;;  %s2080_s10 = inlined_call_operand.hbm [shape: f32[128,128], index: 10, kind: input, shape index: {}]   ;;  %s2081_s11 = inlined_call_operand.vmem [shape: f32[1,128], index: 11, kind: input, shape index: {}]   ;;  %s2082_s12 = inlined_call_operand.hbm [shape: f32[8,128], index: 12, kind: output, shape index: {}]  }
   0x1   :  { %20 = vsyncpa [#allocation10], 0 }
   0x2   :  { %21 = vsyncpa [#allocation13], 0 }
   0x3   :  { %22 = vsyncpa [#allocation8], 0  ;;  %s1654_s21 = smov [#allocation9]   ;;  %s1655_s23 = smov [#allocation6]  }
   0x4   :  { %s46_s22 = sshll.u32 %s1654_s21, 4  ;;  %s28_s24 = sshll.u32 %s1655_s23, 4  ;;  %s47_s22 = int_to_ptr.vmem [resolvable:$true] %s46_s22  ;;  %s29_s24 = int_to_ptr.vmem [resolvable:$true] %s28_s24 }
   0x5   :  { %s1546_s25 = scalar_lea.vmem %s47_s22, 1024  ;;  %p1551_p1 = scmp.lt.s32.totalorder %s47_s22, %s47_s22 }
   0x6   :  { %p1547_p0 = scmp.ne.s32.totalorder %s47_s22, %s1546_s25  ;;  %p1552_p2 = scmp.lt.s32.totalorder %s1546_s25, %s1546_s25 }
   0x8   :  { %p1553_p3 = por %p1552_p2, %p1551_p1 }
   0xa   :  { %p1554_p4 = pnand %p1553_p3, %p1547_p0 }
   0xc   :  { %1557 = shalt.err (!%p1554_p4)
}
   0xd   :  { %s1656_s26 = smov 64   ;;  %s1657_s27 = smov 4  }
   0xe   :  { %52 = dma.hbm_to_vmem [thread:$0]  %s2076_s6, 1024, %s47_s22, [#allocation10], %s1656_s26, %s1656_s26, %s1657_s27  }
   0xf   :  { %s1566_s30 = scalar_lea.vmem %s29_s24, 512  ;;  %p1571_p6 = scmp.lt.s32.totalorder %s29_s24, %s29_s24 }
  0x10   :  { %p1567_p5 = scmp.ne.s32.totalorder %s29_s24, %s1566_s30  ;;  %p1572_p7 = scmp.lt.s32.totalorder %s1566_s30, %s1566_s30 }
  0x12   :  { %p1573_p8 = por %p1572_p7, %p1571_p6 }
  0x14   :  { %p1574_p9 = pnand %p1573_p8, %p1567_p5 }
  0x16   :  { %1577 = shalt.err (!%p1574_p9)
}
  0x17   :  { %34 = dma.hbm_to_vmem [thread:$0]  %s2072_s2, 512, %s29_s24, [#allocation7], %s1656_s26, %s1656_s26, %s1657_s27  }
  0x18   :  { %s1658_s15 = smov [#allocation11]   ;;  %s1659_s17 = smov [#allocation12]  }
  0x19   :  { %s60_s16 = sshll.u32 %s1658_s15, 4  ;;  %s74_s18 = sshll.u32 %s1659_s17, 4  ;;  %s61_s16 = int_to_ptr.vmem [resolvable:$true] %s60_s16  ;;  %s75_s18 = int_to_ptr.vmem [resolvable:$true] %s74_s18 }
  0x1a   :  { %s1586_s19 = scalar_lea.vmem %s61_s16, 1024  ;;  %p1591_p11 = scmp.lt.s32.totalorder %s61_s16, %s61_s16 }
  0x1b   :  { %p1587_p10 = scmp.ne.s32.totalorder %s61_s16, %s1586_s19  ;;  %p1592_p12 = scmp.lt.s32.totalorder %s1586_s19, %s1586_s19 }
  0x1d   :  { %p1593_p13 = por %p1592_p12, %p1591_p11 }
  0x1f   :  { %p1594_p0 = pnand %p1593_p13, %p1587_p10 }
  0x21   :  { %1597 = shalt.err (!%p1594_p0)
}
  0x22   :  { %66 = dma.hbm_to_vmem [thread:$0]  %s2078_s8, 1024, %s61_s16, [#allocation10], %s1656_s26, %s1656_s26, %s1657_s27  }
  0x23   :  { %s1606_s21 = scalar_lea.vmem %s75_s18, 2048  ;;  %p1611_p2 = scmp.lt.s32.totalorder %s75_s18, %s75_s18 }
  0x24   :  { %p1607_p1 = scmp.ne.s32.totalorder %s75_s18, %s1606_s21  ;;  %p1612_p3 = scmp.lt.s32.totalorder %s1606_s21, %s1606_s21 }
  0x26   :  { %p1613_p4 = por %p1612_p3, %p1611_p2 }
  0x28   :  { %p1614_p5 = pnand %p1613_p4, %p1607_p1 }
  0x2a   :  { %1617 = shalt.err (!%p1614_p5)
}
  0x2b   :  { %s1660_s2 = smov 128   ;;  %s1661_s22 = smov 8  }
  0x2c   :  { %80 = dma.hbm_to_vmem [thread:$0]  %s2080_s10, 2048, %s75_s18, [#allocation13], %s1660_s2, %s1660_s2, %s1661_s22  }
  0x2d   :  { %1642 = dma.done.wait [#allocation7], 512  }
  0x2e   :  { %1643 = vsyncadd [#allocation7], 4294966784 }
  0x2f   :  { %1644 = dma.done.wait [#allocation10], 2048  }
  0x30   :  { %1645 = vsyncadd [#allocation10], 4294965248 }
  0x31   :  { %1646 = dma.done.wait [#allocation13], 2048  }
  0x32   :  { %1647 = vsyncadd [#allocation13], 4294965248  ;;  %v1662_v0 = vmov -3.4028235e+38   ;;  %v1747_v1 = vld [vmem:[%s2073_s3] sm:$0xff]  ;;  %v1752_v2 = vld [vmem:[%s2073_s3 + $0x8] sm:$0xff]  ;;  %p1289_p6 = scmp.ge.s32.totalorder %s2070_s0, %s2071_s1 }
  0x33   :  { %100 = vst [vmem:[#allocation2] sm:$0xff] %v1662_v0  ;;  %v1757_v3 = vld [vmem:[%s2073_s3 + $0x10] sm:$0xff]  ;;  %v1762_v4 = vld [vmem:[%s2073_s3 + $0x18] sm:$0xff]  ;;  %v1767_v5 = vld [vmem:[%s2073_s3 + $0x20] sm:$0xff] }
  0x34   :  { %v1772_v6 = vld [vmem:[%s2073_s3 + $0x28] sm:$0xff]  ;;  %v1777_v7 = vld [vmem:[%s2073_s3 + $0x30] sm:$0xff]  ;;  %v1782_v8 = vld [vmem:[%s2073_s3 + $0x38] sm:$0xff] }
  0x35   :  { %v1508_v9 = vld [vmem:[%s2074_s4 + $0x38] sm:$0xff]   ;;  %v1509_v10 = vld [vmem:[%s2074_s4 + $0x30] sm:$0xff]   ;;  %v1510_v11 = vld [vmem:[%s2074_s4 + $0x28] sm:$0xff]  }
  0x36   :  { %1380 = vmatprep.subr.bf16.mxu0 %v1508_v9  ;;  %v1511_v12 = vld [vmem:[%s2074_s4 + $0x20] sm:$0xff]   ;;  %v1516_v13 = vld [vmem:[#allocation6] sm:$0xff]   ;;  %v1512_v14 = vld [vmem:[%s2074_s4 + $0x18] sm:$0xff]  }
  0x37   :  { %1381 = vmatpush3.bf16.msra.mxu0 %v1508_v9  ;;  %1396 = vmatprep.mubr.bf16.mxu0 %v1516_v13  ;;  %v1520_v15 = vld [vmem:[#allocation9 + $0x38] sm:$0xff]   ;;  %v1521_v16 = vld [vmem:[#allocation9 + $0x30] sm:$0xff]   ;;  %v1513_v17 = vld [vmem:[%s2074_s4 + $0x10] sm:$0xff]  }
  0x38   :  { %1382 = vmatprep.subr.bf16.mxu0 %v1509_v10  ;;  %1404 = vmatprep.subr.bf16.mxu1 %v1520_v15  ;;  %v1522_v18 = vld [vmem:[#allocation9 + $0x28] sm:$0xff]   ;;  %v1514_v19 = vld [vmem:[%s2074_s4 + $0x8] sm:$0xff]   ;;  %v1515_v21 = vld [vmem:[%s2074_s4] sm:$0xff]  }
  0x39   :  { %1405 = vmatpush3.bf16.msra.mxu1 %v1520_v15  ;;  %v1523_v20 = vld [vmem:[#allocation9 + $0x20] sm:$0xff]   ;;  %v1524_v22 = vld [vmem:[#allocation9 + $0x18] sm:$0xff]   ;;  %v1517_v23 = vld [vmem:[#allocation6 + $0x8] sm:$0xff]  }
  0x3a   :  { %1406 = vmatprep.subr.bf16.mxu1 %v1521_v16  ;;  %v1518_v24 = vld [vmem:[#allocation6 + $0x10] sm:$0xff]   ;;  %v1519_v25 = vld [vmem:[#allocation6 + $0x18] sm:$0xff]   ;;  %v1526_v27 = vld [vmem:[#allocation9 + $0x8] sm:$0xff]  }
  0x3b   :  { %1383 = vmatpush3.bf16.msra.mxu0 %v1509_v10  ;;  %v1525_v26 = vld [vmem:[#allocation9 + $0x10] sm:$0xff]   ;;  %v1527_v28 = vld [vmem:[#allocation9] sm:$0xff]   ;;  %v1528_v29 = vld [vmem:[#allocation11 + $0x38] sm:$0xff]  }
  0x3c   :  { %1384 = vmatprep.subr.bf16.mxu0 %v1510_v11  ;;  %v1529_v30 = vld [vmem:[#allocation11 + $0x30] sm:$0xff]   ;;  %v1530_v31 = vld [vmem:[#allocation11 + $0x28] sm:$0xff]   ;;  %v1531_v32 = vld [vmem:[#allocation11 + $0x20] sm:$0xff]  }
  0x3d   :  { %1407 = vmatpush3.bf16.msra.mxu1 %v1521_v16  ;;  %v1532_v33 = vld [vmem:[#allocation11 + $0x18] sm:$0xff]   ;;  %v1533_v63 = vld [vmem:[#allocation11 + $0x10] sm:$0xff]   ;;  %v1534_v0 = vld [vmem:[#allocation11 + $0x8] sm:$0xff]  }
  0x3e   :  { %1408 = vmatprep.subr.bf16.mxu1 %v1522_v18  ;;  %v1293_v36 = vld [vmem:[%s2075_s5] ss:$0 sm:$0xff]  ;;  %v1535_v9 = vld [vmem:[#allocation11] sm:$0xff]  }
  0x3f   :  { %1385 = vmatpush3.bf16.msra.mxu0 %v1510_v11 }
  0x40   :  { %1386 = vmatprep.subr.bf16.mxu0 %v1511_v12 }
  0x41   :  { %1409 = vmatpush3.bf16.msra.mxu1 %v1522_v18 }
  0x42   :  { %1410 = vmatprep.subr.bf16.mxu1 %v1523_v20 }
  0x43   :  { %1387 = vmatpush3.bf16.msra.mxu0 %v1511_v12  ;;  %v1306_v12 = vld [vmem:[%s2077_s7] ss:$0 sm:$0xff] }
  0x44   :  { %1388 = vmatprep.subr.bf16.mxu0 %v1512_v14 }
  0x45   :  { %1411 = vmatpush3.bf16.msra.mxu1 %v1523_v20 }
  0x46   :  { %1412 = vmatprep.subr.bf16.mxu1 %v1524_v22 }
  0x47   :  { %1389 = vmatpush3.bf16.msra.mxu0 %v1512_v14 }
  0x48   :  { %1390 = vmatprep.subr.bf16.mxu0 %v1513_v17 }
  0x49   :  { %1413 = vmatpush3.bf16.msra.mxu1 %v1524_v22 }
  0x4a   :  { %1414 = vmatprep.subr.bf16.mxu1 %v1525_v26 }
  0x4b   :  { %1391 = vmatpush3.bf16.msra.mxu0 %v1513_v17 }
  0x4c   :  { %1392 = vmatprep.subr.bf16.mxu0 %v1514_v19 }
  0x4d   :  { %1415 = vmatpush3.bf16.msra.mxu1 %v1525_v26 }
  0x4e   :  { %1416 = vmatprep.subr.bf16.mxu1 %v1526_v27 }
  0x4f   :  { %1393 = vmatpush3.bf16.msra.mxu0 %v1514_v19 }
  0x50   :  { %1394 = vmatprep.subr.bf16.mxu0 %v1515_v21 }
  0x51   :  { %1417 = vmatpush3.bf16.msra.mxu1 %v1526_v27 }
  0x52   :  { %1418 = vmatprep.subr.bf16.mxu1 %v1527_v28 }
  0x53   :  { %1395 = vmatpush3.bf16.msra.mxu0 %v1515_v21 }
  0x54   :  { %1428 = vmatprep.subr.bf16.mxu0 %v1528_v29 }
  0x55   :  { %1419 = vmatpush3.bf16.msra.mxu1 %v1527_v28 }
  0x56   :  { %1397 = vmatmul.mubr.bf16.vlgmr.msra.gmra.mxu0 %v1517_v23 }
  0x57   :  { %1400 = vmatprep.mubr.bf16.mxu0 %v1518_v24  ;;  %1429 = vmatpush3.bf16.msra.mxu0 %v1528_v29 }
  0x58   :  { %1430 = vmatprep.subr.bf16.mxu0 %v1529_v30 }
  0x5b   :  { %1431 = vmatpush3.bf16.msra.mxu0 %v1529_v30 }
  0x5c   :  { %1432 = vmatprep.subr.bf16.mxu0 %v1530_v31 }
  0x5e   :  { %1401 = vmatmul.mubr.bf16.gmra.mxu0 %v1519_v25 }
  0x5f   :  { %1433 = vmatpush3.bf16.msra.mxu0 %v1530_v31 }
  0x60   :  { %1434 = vmatprep.subr.bf16.mxu0 %v1531_v32 }
  0x63   :  { %1435 = vmatpush3.bf16.msra.mxu0 %v1531_v32 }
  0x64   :  { %1436 = vmatprep.subr.bf16.mxu0 %v1532_v33 }
  0x67   :  { %1437 = vmatpush3.bf16.msra.mxu0 %v1532_v33 }
  0x68   :  { %1438 = vmatprep.subr.bf16.mxu0 %v1533_v63 }
  0x6b   :  { %1439 = vmatpush3.bf16.msra.mxu0 %v1533_v63 }
  0x6c   :  { %1440 = vmatprep.subr.bf16.mxu0 %v1534_v0 }
  0x6f   :  { %1441 = vmatpush3.bf16.msra.mxu0 %v1534_v0 }
  0x70   :  { %1442 = vmatprep.subr.bf16.mxu0 %v1535_v9 }
  0x73   :  { %1443 = vmatpush3.bf16.msra.mxu0 %v1535_v9 }
 0x116   :  { %v1398_v34 = vpop.f32.mrf.mxu0 }
 0x117   :  { %v247_v40 = vadd.f32 %v1398_v34, %v1293_v36 }
 0x118   :  { %v238_v35 = vpop.f32.mrf.mxu0 }
 0x119   :  { %v239_v38 = vadd.f32 %v1293_v36, %v238_v35  ;;  %v271_v47 = vmax.f32 %v247_v40, 0.0 }
 0x11a   :  { %v1399_v37 = vpop.f32.mrf.mxu0 }
 0x11b   :  { %v250_v39 = vadd.f32 %v1399_v37, %v1293_v36  ;;  %v269_v45 = vmax.f32 %v239_v38, 0.0 }
 0x11c   :  { %v241_v41 = vpop.f32.mrf.mxu0 }
 0x11d   :  { %v242_v42 = vadd.f32 %v1293_v36, %v241_v41  ;;  %v272_v43 = vmax.f32 %v250_v39, 0.0  ;;  %v1315_v39 = vld [vmem:[%s2079_s9] ss:$0 sm:$0xff] }
 0x11e   :  { %v1402_v44 = vpop.f32.mrf.mxu0 }
 0x11f   :  { %v270_v46 = vmax.f32 %v242_v42, 0.0  ;;  %v278_v50 = vpack.c.bf16 %v272_v43, %v271_v47  ;;  %v263_v54 = vadd.f32 %v1402_v44, %v1293_v36 }
 0x120   :  { %v254_v48 = vpop.f32.mrf.mxu0 }
 0x121   :  { %v277_v49 = vpack.c.bf16 %v270_v46, %v269_v45  ;;  %v255_v52 = vadd.f32 %v1293_v36, %v254_v48  ;;  %v275_v60 = vmax.f32 %v263_v54, 0.0 }
 0x122   :  { %v1403_v51 = vpop.f32.mrf.mxu0 }
 0x123   :  { %v266_v53 = vadd.f32 %v1403_v51, %v1293_v36  ;;  %1420 = vmatprep.mubr.bf16.mxu1 %v277_v49  ;;  %v273_v58 = vmax.f32 %v255_v52, 0.0 }
 0x124   :  { %v257_v55 = vpop.f32.mrf.mxu0  ;;  %1421 = vmatmul.mubr.bf16.vlgmr.msra.gmra.mxu1 %v278_v50 }
 0x125   :  { %v258_v56 = vadd.f32 %v1293_v36, %v257_v55  ;;  %v276_v57 = vmax.f32 %v266_v53, 0.0 }
 0x127   :  { %v274_v59 = vmax.f32 %v258_v56, 0.0  ;;  %v280_v62 = vpack.c.bf16 %v276_v57, %v275_v60 }
 0x129   :  { %v279_v61 = vpack.c.bf16 %v274_v59, %v273_v58 }
 0x12b   :  { %1424 = vmatprep.mubr.bf16.mxu1 %v279_v61 }
 0x12c   :  { %1425 = vmatmul.mubr.bf16.gmra.mxu1 %v280_v62 }
 0x1e4   :  { %v1422_v10 = vpop.f32.mrf.mxu1 }
 0x1e5   :  { %v395_v16 = vadd.f32 %v1422_v10, %v1306_v12 }
 0x1e6   :  { %v386_v11 = vpop.f32.mrf.mxu1 }
 0x1e7   :  { %v387_v14 = vadd.f32 %v1306_v12, %v386_v11  ;;  %v419_v23 = vmax.f32 %v395_v16, 0.0 }
 0x1e8   :  { %v1423_v13 = vpop.f32.mrf.mxu1 }
 0x1e9   :  { %v398_v15 = vadd.f32 %v1423_v13, %v1306_v12  ;;  %v417_v21 = vmax.f32 %v387_v14, 0.0 }
 0x1ea   :  { %v389_v17 = vpop.f32.mrf.mxu1 }
 0x1eb   :  { %v390_v18 = vadd.f32 %v1306_v12, %v389_v17  ;;  %v420_v19 = vmax.f32 %v398_v15, 0.0 }
 0x1ec   :  { %v1426_v20 = vpop.f32.mrf.mxu1 }
 0x1ed   :  { %v418_v22 = vmax.f32 %v390_v18, 0.0  ;;  %v426_v26 = vpack.c.bf16 %v420_v19, %v419_v23  ;;  %v411_v30 = vadd.f32 %v1426_v20, %v1306_v12 }
 0x1ee   :  { %v402_v24 = vpop.f32.mrf.mxu1 }
 0x1ef   :  { %v425_v25 = vpack.c.bf16 %v418_v22, %v417_v21  ;;  %v403_v28 = vadd.f32 %v1306_v12, %v402_v24  ;;  %v423_v36 = vmax.f32 %v411_v30, 0.0 }
 0x1f0   :  { %v1427_v27 = vpop.f32.mrf.mxu1 }
 0x1f1   :  { %v414_v29 = vadd.f32 %v1427_v27, %v1306_v12  ;;  %1444 = vmatprep.mubr.bf16.mxu0 %v425_v25  ;;  %v421_v34 = vmax.f32 %v403_v28, 0.0 }
 0x1f2   :  { %v405_v31 = vpop.f32.mrf.mxu1  ;;  %1445 = vmatmul.mubr.bf16.vlgmr.msra.gmra.mxu0 %v426_v26 }
 0x1f3   :  { %v406_v32 = vadd.f32 %v1306_v12, %v405_v31  ;;  %v424_v33 = vmax.f32 %v414_v29, 0.0 }
 0x1f5   :  { %v422_v35 = vmax.f32 %v406_v32, 0.0  ;;  %v428_v38 = vpack.c.bf16 %v424_v33, %v423_v36 }
 0x1f7   :  { %v427_v37 = vpack.c.bf16 %v422_v35, %v421_v34 }
 0x1f9   :  { %1448 = vmatprep.mubr.bf16.mxu0 %v427_v37 }
 0x1fa   :  { %1449 = vmatmul.mubr.bf16.gmra.mxu0 %v428_v38 }
 0x2b2   :  { %v1446_v40 = vpop.f32.mrf.mxu0 }
 0x2b3   :  { %v1817_v41 = vadd.f32 %v1446_v40, %v1315_v39 }
 0x2b4   :  { %v534_v42 = vpop.f32.mrf.mxu0 }
 0x2b5   :  { %v1819_v43 = vadd.f32 %v1315_v39, %v534_v42 }
 0x2b6   :  { %v1447_v44 = vpop.f32.mrf.mxu0 }
 0x2b7   :  { %v1821_v45 = vadd.f32 %v1447_v44, %v1315_v39 }
 0x2b8   :  { %v537_v46 = vpop.f32.mrf.mxu0 }
 0x2b9   :  { %v1823_v47 = vadd.f32 %v1315_v39, %v537_v46 }
 0x2ba   :  { %v1450_v48 = vpop.f32.mrf.mxu0 }
 0x2bb   :  { %v1825_v49 = vadd.f32 %v1450_v48, %v1315_v39 }
 0x2bc   :  { %v550_v50 = vpop.f32.mrf.mxu0 }
 0x2bd   :  { %v1827_v51 = vadd.f32 %v1315_v39, %v550_v50  ;;  %1290 = sbr.rel (%p1289_p6) target bundleno = 982 (0x3d6), region = 86 }
 0x2be   :  { %v1451_v52 = vpop.f32.mrf.mxu0 }
 0x2bf   :  { %v1829_v53 = vadd.f32 %v1451_v52, %v1315_v39 }
 0x2c0   :  { %v553_v54 = vpop.f32.mrf.mxu0 }
 0x2c1   :  { %v1831_v55 = vadd.f32 %v1315_v39, %v553_v54 }
 0x2c2 LB: > { %v1663_v56 = vmov 0   ;;  %s1850_s21 = sshll.u32 %s1652_s0, 3  ;;  %s578_s0 = sadd.s32 1, %s1652_s0   ;;  %s1652_s0 = sphi %s2070_s0, %s578_s0  }
 0x2c3   : > { %1537 = vset.pattern.permute.xlu1 %v1663_v56  ;;  %1536 = vset.pattern.permute.xlu0 %v1663_v56  ;;  %v582_v57 = vstv %s1850_s21  ;;  %s652_s2 = sadd.s32 1, %s1850_s21  ;;  %s723_s22 = sadd.s32 2, %s1850_s21 }
 0x2c4   : > { %vm585_vm0 = vcmp.eq.s32.totalorder %v1757_v3, %v582_v57  ;;  %vm583_vm1 = vcmp.eq.s32.totalorder %v1747_v1, %v582_v57  ;;  %vm586_vm2 = vcmp.eq.s32.totalorder %v1762_v4, %v582_v57  ;;  %vm584_vm3 = vcmp.eq.s32.totalorder %v1752_v2, %v582_v57  ;;  %s794_s23 = sadd.s32 3, %s1850_s21  ;;  %s865_s24 = sadd.s32 4, %s1850_s21 }
 0x2c5   : > { %v593_v58 = vsel %vm585_vm0, 1, %v1663_v56  ;;  %v591_v59 = vsel %vm583_vm1, 1, %v1663_v56  ;;  %v594_v60 = vsel %vm586_vm2, 1, %v1663_v56  ;;  %v592_v61 = vsel %vm584_vm3, 1, %v1663_v56  ;;  %s936_s8 = sadd.s32 5, %s1850_s21  ;;  %s1007_s25 = sadd.s32 6, %s1850_s21 }
 0x2c6   : > { %606 = vperm.xlu1 %1537, %v593_v58   ;;  %600 = vperm.xlu0 %1536, %v591_v59   ;;  %vm588_vm4 = vcmp.eq.s32.totalorder %v1772_v6, %v582_v57  ;;  %vm587_vm5 = vcmp.eq.s32.totalorder %v1767_v5, %v582_v57  ;;  %vm590_vm6 = vcmp.eq.s32.totalorder %v1782_v8, %v582_v57  ;;  %v653_v0 = vstv %s652_s2  ;;  %s1078_s3 = sadd.s32 7, %s1850_s21  ;;  %s1163_s26 = scalar_lea.vmem [#allocation2], %s1850_s21 }
 0x2c7   : > { %v596_v62 = vsel %vm588_vm4, 1, %v1663_v56  ;;  %v595_v63 = vsel %vm587_vm5, 1, %v1663_v56  ;;  %vm589_vm7 = vcmp.eq.s32.totalorder %v1777_v7, %v582_v57  ;;  %v598_v9 = vsel %vm590_vm6, 1, %v1663_v56  ;;  %p577_p7 = scmp.ge.s32.totalorder %s578_s0, %s2071_s1 }
 0x2c8   : > { %v597_v10 = vsel %vm589_vm7, 1, %v1663_v56  ;;  %vm655_vm8 = vcmp.eq.s32.totalorder %v1752_v2, %v653_v0  ;;  %vm654_vm9 = vcmp.eq.s32.totalorder %v1747_v1, %v653_v0  ;;  %vm657_vm10 = vcmp.eq.s32.totalorder %v1762_v4, %v653_v0 }
 0x2c9   : > { %v663_v11 = vsel %vm655_vm8, 1, %v1663_v56  ;;  %v662_v12 = vsel %vm654_vm9, 1, %v1663_v56  ;;  %vm656_vm11 = vcmp.eq.s32.totalorder %v1757_v3, %v653_v0  ;;  %v665_v13 = vsel %vm657_vm10, 1, %v1663_v56 }
 0x2ca   : > { %609 = vperm.xlu1 %1537, %v594_v60   ;;  %603 = vperm.xlu0 %1536, %v592_v61   ;;  %v664_v14 = vsel %vm656_vm11, 1, %v1663_v56  ;;  %vm659_vm12 = vcmp.eq.s32.totalorder %v1772_v6, %v653_v0  ;;  %vm658_vm13 = vcmp.eq.s32.totalorder %v1767_v5, %v653_v0  ;;  %vm661_vm14 = vcmp.eq.s32.totalorder %v1782_v8, %v653_v0 }
 0x2cb   : > { %v667_v15 = vsel %vm659_vm12, 1, %v1663_v56  ;;  %v666_v16 = vsel %vm658_vm13, 1, %v1663_v56  ;;  %vm660_vm15 = vcmp.eq.s32.totalorder %v1777_v7, %v653_v0  ;;  %v724_v17 = vstv %s723_s22 }
 0x2cc   : > { %v669_v18 = vsel %vm661_vm14, 1, %v1663_v56  ;;  %v668_v19 = vsel %vm660_vm15, 1, %v1663_v56  ;;  %vm726_vm0 = vcmp.eq.s32.totalorder %v1752_v2, %v724_v17  ;;  %vm725_vm1 = vcmp.eq.s32.totalorder %v1747_v1, %v724_v17 }
 0x2cd   : > { %v734_v20 = vsel %vm726_vm0, 1, %v1663_v56  ;;  %v733_v21 = vsel %vm725_vm1, 1, %v1663_v56  ;;  %vm728_vm2 = vcmp.eq.s32.totalorder %v1762_v4, %v724_v17  ;;  %vm727_vm3 = vcmp.eq.s32.totalorder %v1757_v3, %v724_v17 }
 0x2ce   : > { %615 = vperm.xlu1 %1537, %v596_v62   ;;  %612 = vperm.xlu0 %1536, %v595_v63   ;;  %v736_v22 = vsel %vm728_vm2, 1, %v1663_v56  ;;  %v735_v23 = vsel %vm727_vm3, 1, %v1663_v56  ;;  %vm730_vm4 = vcmp.eq.s32.totalorder %v1772_v6, %v724_v17  ;;  %vm729_vm5 = vcmp.eq.s32.totalorder %v1767_v5, %v724_v17 }
 0x2cf   : > { %v738_v24 = vsel %vm730_vm4, 1, %v1663_v56  ;;  %v737_v25 = vsel %vm729_vm5, 1, %v1663_v56  ;;  %vm732_vm6 = vcmp.eq.s32.totalorder %v1782_v8, %v724_v17  ;;  %vm731_vm7 = vcmp.eq.s32.totalorder %v1777_v7, %v724_v17 }
 0x2d0   : > { %v795_v26 = vstv %s794_s23  ;;  %v740_v27 = vsel %vm732_vm6, 1, %v1663_v56  ;;  %v739_v28 = vsel %vm731_vm7, 1, %v1663_v56  ;;  %v866_v35 = vstv %s865_s24 }
 0x2d1   : > { %vm797_vm8 = vcmp.eq.s32.totalorder %v1752_v2, %v795_v26  ;;  %vm796_vm9 = vcmp.eq.s32.totalorder %v1747_v1, %v795_v26  ;;  %vm799_vm10 = vcmp.eq.s32.totalorder %v1762_v4, %v795_v26  ;;  %vm798_vm11 = vcmp.eq.s32.totalorder %v1757_v3, %v795_v26 }
 0x2d2   : > { %621 = vperm.xlu1 %1537, %v598_v9   ;;  %618 = vperm.xlu0 %1536, %v597_v10   ;;  %v805_v29 = vsel %vm797_vm8, 1, %v1663_v56  ;;  %v804_v30 = vsel %vm796_vm9, 1, %v1663_v56  ;;  %v807_v31 = vsel %vm799_vm10, 1, %v1663_v56  ;;  %v806_v32 = vsel %vm798_vm11, 1, %v1663_v56 }
 0x2d3   : > { %vm801_vm12 = vcmp.eq.s32.totalorder %v1772_v6, %v795_v26  ;;  %vm800_vm13 = vcmp.eq.s32.totalorder %v1767_v5, %v795_v26  ;;  %vm803_vm14 = vcmp.eq.s32.totalorder %v1782_v8, %v795_v26  ;;  %vm802_vm15 = vcmp.eq.s32.totalorder %v1777_v7, %v795_v26 }
 0x2d4   : > { %v809_v33 = vsel %vm801_vm12, 1, %v1663_v56  ;;  %v808_v34 = vsel %vm800_vm13, 1, %v1663_v56  ;;  %v811_v36 = vsel %vm803_vm14, 1, %v1663_v56  ;;  %v810_v37 = vsel %vm802_vm15, 1, %v1663_v56 }
 0x2d5   : > { %vm868_vm0 = vcmp.eq.s32.totalorder %v1752_v2, %v866_v35  ;;  %vm867_vm1 = vcmp.eq.s32.totalorder %v1747_v1, %v866_v35  ;;  %vm870_vm2 = vcmp.eq.s32.totalorder %v1762_v4, %v866_v35  ;;  %vm869_vm3 = vcmp.eq.s32.totalorder %v1757_v3, %v866_v35 }
 0x2d6   : > { %674 = vperm.xlu1 %1537, %v663_v11   ;;  %671 = vperm.xlu0 %1536, %v662_v12   ;;  %v876_v38 = vsel %vm868_vm0, 1, %v1663_v56  ;;  %v875_v39 = vsel %vm867_vm1, 1, %v1663_v56  ;;  %v878_v40 = vsel %vm870_vm2, 1, %v1663_v56  ;;  %v877_v42 = vsel %vm869_vm3, 1, %v1663_v56 }
 0x2d7   : > { %vm872_vm4 = vcmp.eq.s32.totalorder %v1772_v6, %v866_v35  ;;  %vm871_vm5 = vcmp.eq.s32.totalorder %v1767_v5, %v866_v35  ;;  %vm874_vm6 = vcmp.eq.s32.totalorder %v1782_v8, %v866_v35  ;;  %vm873_vm7 = vcmp.eq.s32.totalorder %v1777_v7, %v866_v35 }
 0x2d8   : > { %v880_v44 = vsel %vm872_vm4, 1, %v1663_v56  ;;  %v879_v46 = vsel %vm871_vm5, 1, %v1663_v56  ;;  %v937_v48 = vstv %s936_s8  ;;  %v882_v50 = vsel %vm874_vm6, 1, %v1663_v56 }
 0x2d9   : > { %v881_v52 = vsel %vm873_vm7, 1, %v1663_v56  ;;  %vm939_vm8 = vcmp.eq.s32.totalorder %v1752_v2, %v937_v48  ;;  %vm938_vm9 = vcmp.eq.s32.totalorder %v1747_v1, %v937_v48  ;;  %vm941_vm10 = vcmp.eq.s32.totalorder %v1762_v4, %v937_v48 }
 0x2da   : > { %680 = vperm.xlu1 %1537, %v665_v13   ;;  %677 = vperm.xlu0 %1536, %v664_v14   ;;  %v947_v54 = vsel %vm939_vm8, 1, %v1663_v56  ;;  %v946_v57 = vsel %vm938_vm9, 1, %v1663_v56  ;;  %vm940_vm11 = vcmp.eq.s32.totalorder %v1757_v3, %v937_v48  ;;  %v949_v58 = vsel %vm941_vm10, 1, %v1663_v56 }
 0x2db   : > { %v948_v59 = vsel %vm940_vm11, 1, %v1663_v56  ;;  %vm943_vm12 = vcmp.eq.s32.totalorder %v1772_v6, %v937_v48  ;;  %vm942_vm13 = vcmp.eq.s32.totalorder %v1767_v5, %v937_v48  ;;  %vm945_vm14 = vcmp.eq.s32.totalorder %v1782_v8, %v937_v48 }
 0x2dc   : > { %v951_v60 = vsel %vm943_vm12, 1, %v1663_v56  ;;  %v950_v61 = vsel %vm942_vm13, 1, %v1663_v56  ;;  %vm944_vm15 = vcmp.eq.s32.totalorder %v1777_v7, %v937_v48  ;;  %v1008_v62 = vstv %s1007_s25 }
 0x2dd   : > { %v953_v63 = vsel %vm945_vm14, 1, %v1663_v56  ;;  %v952_v0 = vsel %vm944_vm15, 1, %v1663_v56  ;;  %vm1010_vm0 = vcmp.eq.s32.totalorder %v1752_v2, %v1008_v62  ;;  %vm1009_vm1 = vcmp.eq.s32.totalorder %v1747_v1, %v1008_v62 }
 0x2de   : > { %686 = vperm.xlu1 %1537, %v667_v15   ;;  %683 = vperm.xlu0 %1536, %v666_v16   ;;  %v1018_v9 = vsel %vm1010_vm0, 1, %v1663_v56  ;;  %v1017_v10 = vsel %vm1009_vm1, 1, %v1663_v56  ;;  %vm1012_vm2 = vcmp.eq.s32.totalorder %v1762_v4, %v1008_v62  ;;  %vm1011_vm3 = vcmp.eq.s32.totalorder %v1757_v3, %v1008_v62 }
 0x2df   : > { %v1020_v11 = vsel %vm1012_vm2, 1, %v1663_v56  ;;  %v1019_v12 = vsel %vm1011_vm3, 1, %v1663_v56  ;;  %vm1014_vm4 = vcmp.eq.s32.totalorder %v1772_v6, %v1008_v62  ;;  %vm1013_vm5 = vcmp.eq.s32.totalorder %v1767_v5, %v1008_v62 }
 0x2e0   : > { %v1022_v13 = vsel %vm1014_vm4, 1, %v1663_v56  ;;  %v1021_v14 = vsel %vm1013_vm5, 1, %v1663_v56  ;;  %vm1016_vm6 = vcmp.eq.s32.totalorder %v1782_v8, %v1008_v62  ;;  %vm1015_vm7 = vcmp.eq.s32.totalorder %v1777_v7, %v1008_v62 }
 0x2e1   : > { %v1079_v15 = vstv %s1078_s3  ;;  %v1024_v16 = vsel %vm1016_vm6, 1, %v1663_v56  ;;  %v1023_v17 = vsel %vm1015_vm7, 1, %v1663_v56 }
 0x2e2   : > { %692 = vperm.xlu1 %1537, %v669_v18   ;;  %689 = vperm.xlu0 %1536, %v668_v19   ;;  %vm1081_vm8 = vcmp.eq.s32.totalorder %v1752_v2, %v1079_v15  ;;  %vm1080_vm9 = vcmp.eq.s32.totalorder %v1747_v1, %v1079_v15  ;;  %vm1083_vm10 = vcmp.eq.s32.totalorder %v1762_v4, %v1079_v15 }
 0x2e3   : > { %v1089_v18 = vsel %vm1081_vm8, 1, %v1663_v56  ;;  %v1088_v19 = vsel %vm1080_vm9, 1, %v1663_v56  ;;  %vm1082_vm11 = vcmp.eq.s32.totalorder %v1757_v3, %v1079_v15  ;;  %vm1085_vm12 = vcmp.eq.s32.totalorder %v1772_v6, %v1079_v15 }
 0x2e4   : > { %vm1084_vm13 = vcmp.eq.s32.totalorder %v1767_v5, %v1079_v15  ;;  %vm1087_vm14 = vcmp.eq.s32.totalorder %v1782_v8, %v1079_v15  ;;  %vm1086_vm15 = vcmp.eq.s32.totalorder %v1777_v7, %v1079_v15 }
 0x2e6   : > { %745 = vperm.xlu1 %1537, %v734_v20   ;;  %742 = vperm.xlu0 %1536, %v733_v21   ;;  %v1091_v20 = vsel %vm1083_vm10, 1, %v1663_v56  ;;  %v1090_v21 = vsel %vm1082_vm11, 1, %v1663_v56 }
 0x2ea   : > { %751 = vperm.xlu1 %1537, %v736_v22   ;;  %748 = vperm.xlu0 %1536, %v735_v23   ;;  %v1093_v22 = vsel %vm1085_vm12, 1, %v1663_v56  ;;  %v1092_v23 = vsel %vm1084_vm13, 1, %v1663_v56 }
 0x2ee   : > { %757 = vperm.xlu1 %1537, %v738_v24   ;;  %754 = vperm.xlu0 %1536, %v737_v25   ;;  %v1095_v24 = vsel %vm1087_vm14, 1, %v1663_v56  ;;  %v1094_v25 = vsel %vm1086_vm15, 1, %v1663_v56 }
 0x2f2   : > { %763 = vperm.xlu1 %1537, %v740_v27   ;;  %760 = vperm.xlu0 %1536, %v739_v28  }
 0x2f6   : > { %816 = vperm.xlu1 %1537, %v805_v29   ;;  %813 = vperm.xlu0 %1536, %v804_v30  }
 0x2fa   : > { %822 = vperm.xlu1 %1537, %v807_v31   ;;  %819 = vperm.xlu0 %1536, %v806_v32  }
 0x2fe   : > { %828 = vperm.xlu1 %1537, %v809_v33   ;;  %825 = vperm.xlu0 %1536, %v808_v34  }
 0x302   : > { %834 = vperm.xlu1 %1537, %v811_v36   ;;  %831 = vperm.xlu0 %1536, %v810_v37  }
 0x306   : > { %887 = vperm.xlu1 %1537, %v876_v38   ;;  %884 = vperm.xlu0 %1536, %v875_v39  }
 0x30a   : > { %893 = vperm.xlu1 %1537, %v878_v40   ;;  %890 = vperm.xlu0 %1536, %v877_v42  }
 0x30e   : > { %899 = vperm.xlu1 %1537, %v880_v44   ;;  %896 = vperm.xlu0 %1536, %v879_v46  }
 0x312   : > { %905 = vperm.xlu1 %1537, %v882_v50   ;;  %902 = vperm.xlu0 %1536, %v881_v52  }
 0x316   : > { %958 = vperm.xlu1 %1537, %v947_v54   ;;  %955 = vperm.xlu0 %1536, %v946_v57  }
 0x31a   : > { %964 = vperm.xlu1 %1537, %v949_v58   ;;  %961 = vperm.xlu0 %1536, %v948_v59  }
 0x31e   : > { %970 = vperm.xlu1 %1537, %v951_v60   ;;  %967 = vperm.xlu0 %1536, %v950_v61  }
 0x322   : > { %976 = vperm.xlu1 %1537, %v953_v63   ;;  %973 = vperm.xlu0 %1536, %v952_v0  }
 0x326   : > { %1029 = vperm.xlu1 %1537, %v1018_v9   ;;  %1026 = vperm.xlu0 %1536, %v1017_v10  }
 0x32a   : > { %1035 = vperm.xlu1 %1537, %v1020_v11   ;;  %1032 = vperm.xlu0 %1536, %v1019_v12  }
 0x32e   : > { %1041 = vperm.xlu1 %1537, %v1022_v13   ;;  %1038 = vperm.xlu0 %1536, %v1021_v14  }
 0x332   : > { %1047 = vperm.xlu1 %1537, %v1024_v16   ;;  %1044 = vperm.xlu0 %1536, %v1023_v17  }
 0x336   : > { %1100 = vperm.xlu1 %1537, %v1089_v18   ;;  %1097 = vperm.xlu0 %1536, %v1088_v19  }
 0x33a   : > { %1106 = vperm.xlu1 %1537, %v1091_v20   ;;  %1103 = vperm.xlu0 %1536, %v1090_v21  }
 0x33e   : > { %1112 = vperm.xlu1 %1537, %v1093_v22   ;;  %1109 = vperm.xlu0 %1536, %v1092_v23  }
 0x341   : > { %v607_v26 = vpop.permute.xlu1 %606  ;;  %v601_v27 = vpop.permute.xlu0 %600 }
 0x342   : > { %1118 = vperm.xlu1 %1537, %v1095_v24   ;;  %1115 = vperm.xlu0 %1536, %v1094_v25   ;;  %vm623_vm0 = vcmp.eq.s32.totalorder %v601_v27, 1  ;;  %vm625_vm2 = vcmp.eq.s32.totalorder %v607_v26, 1 }
 0x343   : > { %v631_v32 = vsel %vm623_vm0, %v1819_v43, -3.4028235e+38  ;;  %v633_v39 = vsel %vm625_vm2, %v1817_v41, -3.4028235e+38 }
 0x345   : > { %v610_v28 = vpop.permute.xlu1 %609  ;;  %v604_v29 = vpop.permute.xlu0 %603 }
 0x346   : > { %vm624_vm1 = vcmp.eq.s32.totalorder %v604_v29, 1  ;;  %vm626_vm5 = vcmp.eq.s32.totalorder %v610_v28, 1 }
 0x347   : > { %v632_v33 = vsel %vm624_vm1, %v1823_v47, -3.4028235e+38  ;;  %v634_v42 = vsel %vm626_vm5, %v1821_v45, -3.4028235e+38 }
 0x349   : > { %v616_v30 = vpop.permute.xlu1 %615  ;;  %v613_v31 = vpop.permute.xlu0 %612 }
 0x34a   : > { %vm628_vm3 = vcmp.eq.s32.totalorder %v616_v30, 1  ;;  %vm627_vm4 = vcmp.eq.s32.totalorder %v613_v31, 1 }
 0x34b   : > { %v636_v34 = vsel %vm628_vm3, %v1831_v55, -3.4028235e+38  ;;  %v635_v56 = vsel %vm627_vm4, %v1827_v51, -3.4028235e+38 }
 0x34c   : > { %v640_v35 = vmax.f32 %v632_v33, %v636_v34  ;;  %v639_v36 = vmax.f32 %v631_v32, %v635_v56 }
 0x34d   : > { %v622_v37 = vpop.permute.xlu1 %621  ;;  %v619_v38 = vpop.permute.xlu0 %618 }
 0x34e   : > { %v643_v40 = vmax.f32 %v639_v36, %v640_v35  ;;  %vm630_vm6 = vcmp.eq.s32.totalorder %v622_v37, 1  ;;  %vm629_vm7 = vcmp.eq.s32.totalorder %v619_v38, 1 }
 0x34f   : > { %v638_v44 = vsel %vm630_vm6, %v1829_v53, -3.4028235e+38  ;;  %v637_v46 = vsel %vm629_vm7, %v1825_v49, -3.4028235e+38  ;;  %vm1149_vm6 = vcmask 1040384  }
 0x350   : > { %v642_v48 = vmax.f32 %v634_v42, %v638_v44  ;;  %v641_v50 = vmax.f32 %v633_v39, %v637_v46 }
 0x351   : > { %v675_v52 = vpop.permute.xlu1 %674  ;;  %v672_v54 = vpop.permute.xlu0 %671 }
 0x352   : > { %v644_v57 = vmax.f32 %v641_v50, %v642_v48  ;;  %vm695_vm8 = vcmp.eq.s32.totalorder %v675_v52, 1  ;;  %vm694_vm9 = vcmp.eq.s32.totalorder %v672_v54, 1 }
 0x353   : > { %v703_v0 = vsel %vm695_vm8, %v1823_v47, -3.4028235e+38  ;;  %v702_v9 = vsel %vm694_vm9, %v1819_v43, -3.4028235e+38 }
 0x354   : > { %v645_v58 = vmax.f32 %v643_v40, %v644_v57 }
 0x355   : > { %v681_v59 = vpop.permute.xlu1 %680  ;;  %v678_v60 = vpop.permute.xlu0 %677 }
 0x356   : > { %v646_v61 = vrot.slane %v645_v58, 4  ;;  %vm697_vm12 = vcmp.eq.s32.totalorder %v681_v59, 1  ;;  %vm696_vm13 = vcmp.eq.s32.totalorder %v678_v60, 1 }
 0x357   : > { %v705_v17 = vsel %vm697_vm12, %v1821_v45, -3.4028235e+38  ;;  %v704_v19 = vsel %vm696_vm13, %v1817_v41, -3.4028235e+38 }
 0x358   : > { %v647_v14 = vmax.f32 %v645_v58, %v646_v61 }
 0x359   : > { %v687_v62 = vpop.permute.xlu1 %686  ;;  %v684_v63 = vpop.permute.xlu0 %683 }
 0x35a   : > { %vm699_vm10 = vcmp.eq.s32.totalorder %v687_v62, 1  ;;  %vm698_vm11 = vcmp.eq.s32.totalorder %v684_v63, 1  ;;  %v648_v24 = vrot.slane %v647_v14, 2 }
 0x35b   : > { %v707_v10 = vsel %vm699_vm10, %v1831_v55, -3.4028235e+38  ;;  %v706_v11 = vsel %vm698_vm11, %v1827_v51, -3.4028235e+38 }
 0x35c   : > { %v711_v12 = vmax.f32 %v703_v0, %v707_v10  ;;  %v710_v13 = vmax.f32 %v702_v9, %v706_v11  ;;  %v649_v29 = vmax.f32 %v647_v14, %v648_v24 }
 0x35d   : > { %v693_v15 = vpop.permute.xlu1 %692  ;;  %v690_v16 = vpop.permute.xlu0 %689 }
 0x35e   : > { %v714_v18 = vmax.f32 %v710_v13, %v711_v12  ;;  %vm701_vm14 = vcmp.eq.s32.totalorder %v693_v15, 1  ;;  %vm700_vm15 = vcmp.eq.s32.totalorder %v690_v16, 1  ;;  %v650_v34 = vrot.slane %v649_v29, 1 }
 0x35f   : > { %v709_v20 = vsel %vm701_vm14, %v1829_v53, -3.4028235e+38  ;;  %v708_v21 = vsel %vm700_vm15, %v1825_v49, -3.4028235e+38  ;;  %vm1151_vm15 = vcmask 1041408  }
 0x360   : > { %v713_v22 = vmax.f32 %v705_v17, %v709_v20  ;;  %v712_v23 = vmax.f32 %v704_v19, %v708_v21  ;;  %v651_v61 = vmax.f32 %v649_v29, %v650_v34 }
 0x361   : > { %v746_v25 = vpop.permute.xlu1 %745  ;;  %v743_v26 = vpop.permute.xlu0 %742 }
 0x362   : > { %v715_v27 = vmax.f32 %v712_v23, %v713_v22  ;;  %vm766_vm0 = vcmp.eq.s32.totalorder %v746_v25, 1  ;;  %vm765_vm1 = vcmp.eq.s32.totalorder %v743_v26, 1 }
 0x363   : > { %v774_v56 = vsel %vm766_vm0, %v1823_v47, -3.4028235e+38  ;;  %v773_v38 = vsel %vm765_vm1, %v1819_v43, -3.4028235e+38 }
 0x364   : > { %v716_v28 = vmax.f32 %v714_v18, %v715_v27 }
 0x365   : > { %v752_v30 = vpop.permute.xlu1 %751  ;;  %v749_v31 = vpop.permute.xlu0 %748 }
 0x366   : > { %v717_v32 = vrot.slane %v716_v28, 4  ;;  %vm768_vm2 = vcmp.eq.s32.totalorder %v752_v30, 1  ;;  %vm767_vm5 = vcmp.eq.s32.totalorder %v749_v31, 1 }
 0x367   : > { %v776_v48 = vsel %vm768_vm2, %v1821_v45, -3.4028235e+38  ;;  %v775_v58 = vsel %vm767_vm5, %v1817_v41, -3.4028235e+38  ;;  %vm1153_vm2 = vcmask 1042432  }
 0x368   : > { %v718_v33 = vmax.f32 %v716_v28, %v717_v32 }
 0x369   : > { %v758_v35 = vpop.permute.xlu1 %757  ;;  %v755_v36 = vpop.permute.xlu0 %754 }
 0x36a   : > { %v719_v37 = vrot.slane %v718_v33, 2  ;;  %vm770_vm3 = vcmp.eq.s32.totalorder %v758_v35, 1  ;;  %vm769_vm4 = vcmp.eq.s32.totalorder %v755_v36, 1 }
 0x36b   : > { %v778_v39 = vsel %vm770_vm3, %v1831_v55, -3.4028235e+38  ;;  %v777_v40 = vsel %vm769_vm4, %v1827_v51, -3.4028235e+38 }
 0x36c   : > { %v720_v42 = vmax.f32 %v718_v33, %v719_v37  ;;  %v782_v44 = vmax.f32 %v774_v56, %v778_v39  ;;  %v781_v46 = vmax.f32 %v773_v38, %v777_v40 }
 0x36d   : > { %v764_v50 = vpop.permute.xlu1 %763  ;;  %v761_v52 = vpop.permute.xlu0 %760 }
 0x36e   : > { %v721_v54 = vrot.slane %v720_v42, 1  ;;  %v785_v57 = vmax.f32 %v781_v46, %v782_v44  ;;  %vm772_vm7 = vcmp.eq.s32.totalorder %v764_v50, 1  ;;  %vm771_vm8 = vcmp.eq.s32.totalorder %v761_v52, 1 }
 0x36f   : > { %v780_v59 = vsel %vm772_vm7, %v1829_v53, -3.4028235e+38  ;;  %v779_v60 = vsel %vm771_vm8, %v1825_v49, -3.4028235e+38 }
 0x370   : > { %v722_v62 = vmax.f32 %v720_v42, %v721_v54  ;;  %v784_v63 = vmax.f32 %v776_v48, %v780_v59  ;;  %v783_v0 = vmax.f32 %v775_v58, %v779_v60 }
 0x371   : > { %v817_v9 = vpop.permute.xlu1 %816  ;;  %v814_v10 = vpop.permute.xlu0 %813 }
 0x372   : > { %v1150_v11 = vsel %vm1149_vm6, %v651_v61, %v722_v62  ;;  %v786_v12 = vmax.f32 %v783_v0, %v784_v63  ;;  %vm837_vm9 = vcmp.eq.s32.totalorder %v817_v9, 1  ;;  %vm836_vm10 = vcmp.eq.s32.totalorder %v814_v10, 1 }
 0x373   : > { %v845_v18 = vsel %vm837_vm9, %v1823_v47, -3.4028235e+38  ;;  %v844_v22 = vsel %vm836_vm10, %v1819_v43, -3.4028235e+38 }
 0x374   : > { %v787_v13 = vmax.f32 %v785_v57, %v786_v12 }
 0x375   : > { %v823_v14 = vpop.permute.xlu1 %822  ;;  %v820_v15 = vpop.permute.xlu0 %819 }
 0x376   : > { %v788_v16 = vrot.slane %v787_v13, 4  ;;  %vm839_vm11 = vcmp.eq.s32.totalorder %v823_v14, 1  ;;  %vm838_vm14 = vcmp.eq.s32.totalorder %v820_v15, 1 }
 0x377   : > { %v847_v28 = vsel %vm839_vm11, %v1821_v45, -3.4028235e+38  ;;  %v846_v33 = vsel %vm838_vm14, %v1817_v41, -3.4028235e+38 }
 0x378   : > { %v789_v17 = vmax.f32 %v787_v13, %v788_v16 }
 0x379   : > { %v829_v19 = vpop.permute.xlu1 %828  ;;  %v826_v20 = vpop.permute.xlu0 %825 }
 0x37a   : > { %v790_v21 = vrot.slane %v789_v17, 2  ;;  %vm841_vm12 = vcmp.eq.s32.totalorder %v829_v19, 1  ;;  %vm840_vm13 = vcmp.eq.s32.totalorder %v826_v20, 1 }
 0x37b   : > { %v849_v23 = vsel %vm841_vm12, %v1831_v55, -3.4028235e+38  ;;  %v848_v24 = vsel %vm840_vm13, %v1827_v51, -3.4028235e+38 }
 0x37c   : > { %v791_v25 = vmax.f32 %v789_v17, %v790_v21  ;;  %v853_v26 = vmax.f32 %v845_v18, %v849_v23  ;;  %v852_v27 = vmax.f32 %v844_v22, %v848_v24 }
 0x37d   : > { %v835_v29 = vpop.permute.xlu1 %834  ;;  %v832_v30 = vpop.permute.xlu0 %831 }
 0x37e   : > { %v792_v31 = vrot.slane %v791_v25, 1  ;;  %v856_v32 = vmax.f32 %v852_v27, %v853_v26  ;;  %vm843_vm0 = vcmp.eq.s32.totalorder %v835_v29, 1  ;;  %vm842_vm1 = vcmp.eq.s32.totalorder %v832_v30, 1 }
 0x37f   : > { %v851_v34 = vsel %vm843_vm0, %v1829_v53, -3.4028235e+38  ;;  %v850_v56 = vsel %vm842_vm1, %v1825_v49, -3.4028235e+38 }
 0x380   : > { %v793_v35 = vmax.f32 %v791_v25, %v792_v31  ;;  %v855_v36 = vmax.f32 %v847_v28, %v851_v34  ;;  %v854_v37 = vmax.f32 %v846_v33, %v850_v56 }
 0x381   : > { %v888_v38 = vpop.permute.xlu1 %887  ;;  %v885_v39 = vpop.permute.xlu0 %884 }
 0x382   : > { %v1152_v40 = vsel %vm1151_vm15, %v1150_v11, %v793_v35  ;;  %v857_v42 = vmax.f32 %v854_v37, %v855_v36  ;;  %vm908_vm5 = vcmp.eq.s32.totalorder %v888_v38, 1  ;;  %vm907_vm6 = vcmp.eq.s32.totalorder %v885_v39, 1 }
 0x383   : > { %v916_v19 = vsel %vm908_vm5, %v1823_v47, -3.4028235e+38  ;;  %v915_v22 = vsel %vm907_vm6, %v1819_v43, -3.4028235e+38 }
 0x384   : > { %v858_v44 = vmax.f32 %v856_v32, %v857_v42 }
 0x385   : > { %v894_v46 = vpop.permute.xlu1 %893  ;;  %v891_v48 = vpop.permute.xlu0 %890 }
 0x386   : > { %v859_v50 = vrot.slane %v858_v44, 4  ;;  %vm910_vm9 = vcmp.eq.s32.totalorder %v894_v46, 1  ;;  %vm909_vm10 = vcmp.eq.s32.totalorder %v891_v48, 1 }
 0x387   : > { %v918_v27 = vsel %vm910_vm9, %v1821_v45, -3.4028235e+38  ;;  %v917_v28 = vsel %vm909_vm10, %v1817_v41, -3.4028235e+38 }
 0x388   : > { %v860_v52 = vmax.f32 %v858_v44, %v859_v50 }
 0x389   : > { %v900_v54 = vpop.permute.xlu1 %899  ;;  %v897_v57 = vpop.permute.xlu0 %896 }
 0x38a   : > { %v861_v58 = vrot.slane %v860_v52, 2  ;;  %vm912_vm3 = vcmp.eq.s32.totalorder %v900_v54, 1  ;;  %vm911_vm4 = vcmp.eq.s32.totalorder %v897_v57, 1 }
 0x38b   : > { %v920_v17 = vsel %vm912_vm3, %v1831_v55, -3.4028235e+38  ;;  %v919_v18 = vsel %vm911_vm4, %v1827_v51, -3.4028235e+38 }
 0x38c   : > { %v862_v59 = vmax.f32 %v860_v52, %v861_v58  ;;  %v924_v25 = vmax.f32 %v916_v19, %v920_v17  ;;  %v923_v26 = vmax.f32 %v915_v22, %v919_v18 }
 0x38d   : > { %v906_v60 = vpop.permute.xlu1 %905  ;;  %v903_v61 = vpop.permute.xlu0 %902 }
 0x38e   : > { %v863_v62 = vrot.slane %v862_v59, 1  ;;  %vm914_vm7 = vcmp.eq.s32.totalorder %v906_v60, 1  ;;  %vm913_vm8 = vcmp.eq.s32.totalorder %v903_v61, 1  ;;  %v927_v33 = vmax.f32 %v923_v26, %v924_v25 }
 0x38f   : > { %v922_v23 = vsel %vm914_vm7, %v1829_v53, -3.4028235e+38  ;;  %v921_v24 = vsel %vm913_vm8, %v1825_v49, -3.4028235e+38 }
 0x390   : > { %v864_v63 = vmax.f32 %v862_v59, %v863_v62  ;;  %v926_v29 = vmax.f32 %v918_v27, %v922_v23  ;;  %v925_v30 = vmax.f32 %v917_v28, %v921_v24 }
 0x391   : > { %v959_v0 = vpop.permute.xlu1 %958  ;;  %v956_v9 = vpop.permute.xlu0 %955 }
 0x392   : > { %v2022_v10 = vsel %vm1153_vm2, %v1152_v40, %v864_v63  ;;  %vm979_vm11 = vcmp.eq.s32.totalorder %v959_v0, 1  ;;  %vm978_vm12 = vcmp.eq.s32.totalorder %v956_v9, 1  ;;  %v928_v36 = vmax.f32 %v925_v30, %v926_v29 }
 0x393   : > { %v987_v34 = vsel %vm979_vm11, %v1823_v47, -3.4028235e+38  ;;  %v986_v56 = vsel %vm978_vm12, %v1819_v43, -3.4028235e+38 }
 0x395   : > { %v965_v11 = vpop.permute.xlu1 %964  ;;  %v962_v12 = vpop.permute.xlu0 %961 }
 0x396   : > { %vm981_vm1 = vcmp.eq.s32.totalorder %v965_v11, 1  ;;  %vm980_vm2 = vcmp.eq.s32.totalorder %v962_v12, 1 }
 0x397   : > { %v989_v44 = vsel %vm981_vm1, %v1821_v45, -3.4028235e+38  ;;  %v988_v46 = vsel %vm980_vm2, %v1817_v41, -3.4028235e+38 }
 0x399   : > { %v971_v13 = vpop.permute.xlu1 %970  ;;  %v968_v14 = vpop.permute.xlu0 %967 }
 0x39a   : > { %vm983_vm13 = vcmp.eq.s32.totalorder %v971_v13, 1  ;;  %vm982_vm14 = vcmp.eq.s32.totalorder %v968_v14, 1  ;;  %v929_v14 = vmax.f32 %v927_v33, %v928_v36 }
 0x39b   : > { %v991_v35 = vsel %vm983_vm13, %v1831_v55, -3.4028235e+38  ;;  %v990_v37 = vsel %vm982_vm14, %v1827_v51, -3.4028235e+38 }
 0x39c   : > { %v995_v57 = vmax.f32 %v987_v34, %v991_v35  ;;  %v994_v58 = vmax.f32 %v986_v56, %v990_v37  ;;  %v930_v23 = vrot.slane %v929_v14, 4 }
 0x39d   : > { %v977_v15 = vpop.permute.xlu1 %976  ;;  %v974_v16 = vpop.permute.xlu0 %973 }
 0x39e   : > { %vm985_vm15 = vcmp.eq.s32.totalorder %v977_v15, 1  ;;  %vm984_vm0 = vcmp.eq.s32.totalorder %v974_v16, 1  ;;  %v931_v28 = vmax.f32 %v929_v14, %v930_v23 }
 0x39f   : > { %v993_v38 = vsel %vm985_vm15, %v1829_v53, -3.4028235e+38  ;;  %v992_v39 = vsel %vm984_vm0, %v1825_v49, -3.4028235e+38 }
 0x3a0   : > { %v997_v48 = vmax.f32 %v989_v44, %v993_v38  ;;  %v996_v50 = vmax.f32 %v988_v46, %v992_v39  ;;  %v932_v56 = vrot.slane %v931_v28, 2 }
 0x3a1   : > { %v1030_v20 = vpop.permute.xlu1 %1029  ;;  %v1027_v21 = vpop.permute.xlu0 %1026 }
 0x3a2   : > { %vm1050_vm3 = vcmp.eq.s32.totalorder %v1030_v20, 1  ;;  %vm1049_vm4 = vcmp.eq.s32.totalorder %v1027_v21, 1  ;;  %v999_v15 = vmax.f32 %v996_v50, %v997_v48  ;;  %v998_v20 = vmax.f32 %v994_v58, %v995_v57 }
 0x3a3   : > { %v1058_v59 = vsel %vm1050_vm3, %v1823_v47, -3.4028235e+38  ;;  %v1057_v60 = vsel %vm1049_vm4, %v1819_v43, -3.4028235e+38  ;;  %vm1155_vm3 = vcmask 1043456   ;;  %vm1157_vm4 = vcmask 1044480  }
 0x3a4   : > { %v1000_v24 = vmax.f32 %v998_v20, %v999_v15 }
 0x3a5   : > { %v1036_v31 = vpop.permute.xlu1 %1035  ;;  %v1033_v32 = vpop.permute.xlu0 %1032 }
 0x3a6   : > { %vm1052_vm7 = vcmp.eq.s32.totalorder %v1036_v31, 1  ;;  %vm1051_vm8 = vcmp.eq.s32.totalorder %v1033_v32, 1  ;;  %v1001_v29 = vrot.slane %v1000_v24, 4 }
 0x3a7   : > { %v1060_v63 = vsel %vm1052_vm7, %v1821_v45, -3.4028235e+38  ;;  %v1059_v0 = vsel %vm1051_vm8, %v1817_v41, -3.4028235e+38 }
 0x3a8   : > { %v1002_v35 = vmax.f32 %v1000_v24, %v1001_v29  ;;  %v1164_v24 = vld [vmem:[%s1163_s26] sm:$0xff] }
 0x3a9   : > { %v1042_v40 = vpop.permute.xlu1 %1041  ;;  %v1039_v42 = vpop.permute.xlu0 %1038 }
 0x3aa   : > { %vm1054_vm5 = vcmp.eq.s32.totalorder %v1042_v40, 1  ;;  %vm1053_vm6 = vcmp.eq.s32.totalorder %v1039_v42, 1 }
 0x3ab   : > { %v1062_v52 = vsel %vm1054_vm5, %v1831_v55, -3.4028235e+38  ;;  %v1061_v54 = vsel %vm1053_vm6, %v1827_v51, -3.4028235e+38  ;;  %vm1159_vm5 = vcmask 1045504   ;;  %vm1161_vm6 = vcmask 1046528  }
 0x3ac   : > { %v1066_v9 = vmax.f32 %v1058_v59, %v1062_v52  ;;  %v1065_v11 = vmax.f32 %v1057_v60, %v1061_v54  ;;  %v1003_v54 = vrot.slane %v1002_v35, 2 }
 0x3ad   : > { %v1048_v61 = vpop.permute.xlu1 %1047  ;;  %v1045_v62 = vpop.permute.xlu0 %1044 }
 0x3ae   : > { %vm1056_vm9 = vcmp.eq.s32.totalorder %v1048_v61, 1  ;;  %vm1055_vm10 = vcmp.eq.s32.totalorder %v1045_v62, 1  ;;  %v1069_v22 = vmax.f32 %v1065_v11, %v1066_v9  ;;  %v933_v62 = vmax.f32 %v931_v28, %v932_v56 }
 0x3af   : > { %v1064_v12 = vsel %vm1056_vm9, %v1829_v53, -3.4028235e+38  ;;  %v1063_v13 = vsel %vm1055_vm10, %v1825_v49, -3.4028235e+38 }
 0x3b0   : > { %v1068_v16 = vmax.f32 %v1060_v63, %v1064_v12  ;;  %v1067_v17 = vmax.f32 %v1059_v0, %v1063_v13  ;;  %v1004_v63 = vmax.f32 %v1002_v35, %v1003_v54  ;;  %v934_v12 = vrot.slane %v933_v62, 1 }
 0x3b1   : > { %v1101_v18 = vpop.permute.xlu1 %1100  ;;  %v1098_v19 = vpop.permute.xlu0 %1097 }
 0x3b2   : > { %v1070_v21 = vmax.f32 %v1067_v17, %v1068_v16  ;;  %vm1121_vm11 = vcmp.eq.s32.totalorder %v1101_v18, 1  ;;  %vm1120_vm12 = vcmp.eq.s32.totalorder %v1098_v19, 1  ;;  %v1005_v13 = vrot.slane %v1004_v63, 1 }
 0x3b3   : > { %v1129_v37 = vsel %vm1121_vm11, %v1823_v47, -3.4028235e+38  ;;  %v1128_v38 = vsel %vm1120_vm12, %v1819_v43, -3.4028235e+38  ;;  %v935_v17 = vmax.f32 %v933_v62, %v934_v12 }
 0x3b4   : > { %v1071_v25 = vmax.f32 %v1069_v22, %v1070_v21  ;;  %v1006_v18 = vmax.f32 %v1004_v63, %v1005_v13 }
 0x3b5   : > { %v1107_v26 = vpop.permute.xlu1 %1106  ;;  %v1104_v27 = vpop.permute.xlu0 %1103  ;;  %v1156_v22 = vsel %vm1155_vm3, %v2022_v10, %v935_v17 }
 0x3b6   : > { %v1072_v30 = vrot.slane %v1071_v25, 4  ;;  %vm1123_vm13 = vcmp.eq.s32.totalorder %v1107_v26, 1  ;;  %vm1122_vm0 = vcmp.eq.s32.totalorder %v1104_v27, 1  ;;  %v1158_v23 = vsel %vm1157_vm4, %v1156_v22, %v1006_v18 }
 0x3b7   : > { %v1131_v39 = vsel %vm1123_vm13, %v1821_v45, -3.4028235e+38  ;;  %v1130_v48 = vsel %vm1122_vm0, %v1817_v41, -3.4028235e+38 }
 0x3b8   : > { %v1073_v36 = vmax.f32 %v1071_v25, %v1072_v30 }
 0x3b9   : > { %v1113_v31 = vpop.permute.xlu1 %1112  ;;  %v1110_v32 = vpop.permute.xlu0 %1109 }
 0x3ba   : > { %vm1125_vm14 = vcmp.eq.s32.totalorder %v1113_v31, 1  ;;  %vm1124_vm15 = vcmp.eq.s32.totalorder %v1110_v32, 1  ;;  %v1074_v59 = vrot.slane %v1073_v36, 2 }
 0x3bb   : > { %v1133_v33 = vsel %vm1125_vm14, %v1831_v55, -3.4028235e+38  ;;  %v1132_v34 = vsel %vm1124_vm15, %v1827_v51, -3.4028235e+38 }
 0x3bc   : > { %v1137_v44 = vmax.f32 %v1129_v37, %v1133_v33  ;;  %v1136_v46 = vmax.f32 %v1128_v38, %v1132_v34  ;;  %v1075_v9 = vmax.f32 %v1073_v36, %v1074_v59 }
 0x3bd   : > { %v1119_v40 = vpop.permute.xlu1 %1118  ;;  %v1116_v42 = vpop.permute.xlu0 %1115 }
 0x3be   : > { %vm1127_vm1 = vcmp.eq.s32.totalorder %v1119_v40, 1  ;;  %vm1126_vm2 = vcmp.eq.s32.totalorder %v1116_v42, 1  ;;  %v1140_v60 = vmax.f32 %v1136_v46, %v1137_v44  ;;  %v1076_v15 = vrot.slane %v1075_v9, 1 }
 0x3bf   : > { %v1135_v50 = vsel %vm1127_vm1, %v1829_v53, -3.4028235e+38  ;;  %v1134_v52 = vsel %vm1126_vm2, %v1825_v49, -3.4028235e+38 }
 0x3c0   : > { %v1139_v57 = vmax.f32 %v1131_v39, %v1135_v50  ;;  %v1138_v58 = vmax.f32 %v1130_v48, %v1134_v52  ;;  %v1077_v20 = vmax.f32 %v1075_v9, %v1076_v15 }
 0x3c2   : > { %v1141_v61 = vmax.f32 %v1138_v58, %v1139_v57  ;;  %v1160_v26 = vsel %vm1159_vm5, %v1158_v23, %v1077_v20 }
 0x3c4   : > { %v1142_v0 = vmax.f32 %v1140_v60, %v1141_v61 }
 0x3c6   : > { %v1143_v11 = vrot.slane %v1142_v0, 4 }
 0x3c8   : > { %v1144_v14 = vmax.f32 %v1142_v0, %v1143_v11 }
 0x3ca   : > { %v1145_v16 = vrot.slane %v1144_v14, 2 }
 0x3cc   : > { %v1146_v19 = vmax.f32 %v1144_v14, %v1145_v16 }
 0x3ce   : > { %v1147_v21 = vrot.slane %v1146_v19, 1 }
 0x3d0   : > { %v1148_v25 = vmax.f32 %v1146_v19, %v1147_v21 }
 0x3d1   :  { %580 = sbr.rel (!%p577_p7) target bundleno = 706 (0x2c2), region = 92 }
 0x3d2   : > { %v1162_v27 = vsel %vm1161_vm6, %v1160_v26, %v1148_v25 }
 0x3d3   : > { %v1165_v28 = vmax.f32 %v1164_v24, %v1162_v27 }
 0x3d5   : > { %1166 = vst [vmem:[%s1163_s26] sm:$0xff] %v1165_v28 }
 0x3d6 PF:  { %v1190_v10 = vld [vmem:[#allocation12 + $0x78] sm:$0xff]  ;;  %v1664_v29 = vmov 0.0   ;;  %v1189_v30 = vld [vmem:[#allocation12 + $0x70] sm:$0xff]  ;;  %vm1665_vm7 = vmmov 0   ;;  %v1188_v31 = vld [vmem:[#allocation12 + $0x68] sm:$0xff]  ;;  %v1171_v7 = vlaneseq  ;;  %s1666_s10 = smov [#allocation14]  }
 0x3d7   :  { %1452 = vmatprep.subr.mxu1 %v1664_v29  ;;  %1484 = vmatprep.mubr.msk.f32.mxu1 %vm1665_vm7, %v1664_v29  ;;  %v1187_v32 = vld [vmem:[#allocation12 + $0x60] sm:$0xff]  ;;  %v1186_v33 = vld [vmem:[#allocation12 + $0x58] sm:$0xff]  ;;  %v1185_v34 = vld [vmem:[#allocation12 + $0x50] sm:$0xff]  ;;  %s1275_s29 = sshll.u32 %s1666_s10, 4  ;;  %s1276_s29 = int_to_ptr.vmem [resolvable:$true] %s1275_s29 }
 0x3d8   :  { %1453 = vmatpush3.msra.mxu1 %v1190_v10  ;;  %v1184_v1 = vld [vmem:[#allocation12 + $0x48] sm:$0xff]  ;;  %v1183_v2 = vld [vmem:[#allocation12 + $0x40] sm:$0xff]  ;;  %v1182_v3 = vld [vmem:[#allocation12 + $0x38] sm:$0xff]  ;;  %v1172_v43 = vshrl.u32 %v1171_v7, 7  ;;  %s1618_s30 = scalar_lea.vmem %s1276_s29, 128  ;;  %p1623_p9 = scmp.lt.s32.totalorder %s1276_s29, %s1276_s29 }
 0x3d9   :  { %1454 = vmatprep.subr.mxu1 %v1664_v29  ;;  %v1181_v4 = vld [vmem:[#allocation12 + $0x30] sm:$0xff]  ;;  %v1180_v5 = vld [vmem:[#allocation12 + $0x28] sm:$0xff]  ;;  %v1179_v6 = vld [vmem:[#allocation12 + $0x20] sm:$0xff]  ;;  %p1619_p8 = scmp.ne.s32.totalorder %s1276_s29, %s1618_s30  ;;  %p1624_p10 = scmp.lt.s32.totalorder %s1618_s30, %s1618_s30 }
 0x3da   :  { %1455 = vmatpush3.msra.mxu1 %v1189_v30  ;;  %v1178_v8 = vld [vmem:[#allocation12 + $0x18] sm:$0xff]  ;;  %v1177_v41 = vld [vmem:[#allocation12 + $0x10] sm:$0xff]  ;;  %v1176_v45 = vld [vmem:[#allocation12 + $0x8] sm:$0xff]  ;;  %vm1173_vm8 = vcmp.lt.s32.totalorder %v1172_v43, 4 }
 0x3db   :  { %1456 = vmatprep.subr.mxu1 %v1664_v29  ;;  %v1175_v47 = vld [vmem:[#allocation12] sm:$0xff]  ;;  %v1325_v51 = vld [vmem:[%s2081_s11] ss:$0 sm:$0xff]  ;;  %p1625_p11 = por %p1624_p10, %p1623_p9 }
 0x3dc   :  { %1457 = vmatpush3.msra.mxu1 %v1188_v31  ;;  %v1170_v49 = vld [vmem:[#allocation2] sm:$0xff] }
 0x3dd   :  { %1458 = vmatprep.subr.mxu1 %v1664_v29  ;;  %p1626_p12 = pnand %p1625_p11, %p1619_p8 }
 0x3de   :  { %1459 = vmatpush3.msra.mxu1 %v1187_v32 }
 0x3df   :  { %1460 = vmatprep.subr.mxu1 %v1664_v29 }
 0x3e0   :  { %1461 = vmatpush3.msra.mxu1 %v1186_v33 }
 0x3e1   :  { %1462 = vmatprep.subr.mxu1 %v1664_v29 }
 0x3e2   :  { %1463 = vmatpush3.msra.mxu1 %v1185_v34 }
 0x3e3   :  { %1464 = vmatprep.subr.mxu1 %v1664_v29 }
 0x3e4   :  { %1465 = vmatpush3.msra.mxu1 %v1184_v1 }
 0x3e5   :  { %1466 = vmatprep.subr.mxu1 %v1664_v29 }
 0x3e6   :  { %1467 = vmatpush3.msra.mxu1 %v1183_v2 }
 0x3e7   :  { %1468 = vmatprep.subr.mxu1 %v1664_v29 }
 0x3e8   :  { %1469 = vmatpush3.msra.mxu1 %v1182_v3 }
 0x3e9   :  { %1470 = vmatprep.subr.mxu1 %v1664_v29 }
 0x3ea   :  { %1471 = vmatpush3.msra.mxu1 %v1181_v4 }
 0x3eb   :  { %1472 = vmatprep.subr.mxu1 %v1664_v29 }
 0x3ec   :  { %1473 = vmatpush3.msra.mxu1 %v1180_v5 }
 0x3ed   :  { %1474 = vmatprep.subr.mxu1 %v1664_v29 }
 0x3ee   :  { %1475 = vmatpush3.msra.mxu1 %v1179_v6 }
 0x3ef   :  { %1476 = vmatprep.subr.mxu1 %v1664_v29 }
 0x3f0   :  { %1477 = vmatpush3.msra.mxu1 %v1178_v8 }
 0x3f1   :  { %1478 = vmatprep.subr.mxu1 %v1664_v29 }
 0x3f2   :  { %1479 = vmatpush3.msra.mxu1 %v1177_v41 }
 0x3f3   :  { %1480 = vmatprep.subr.mxu1 %v1664_v29 }
 0x3f4   :  { %1481 = vmatpush3.msra.mxu1 %v1176_v45 }
 0x3f5   :  { %1482 = vmatprep.subr.mxu1 %v1664_v29 }
 0x3f6   :  { %1483 = vmatpush3.msra.mxu1 %v1175_v47 }
 0x3f7   :  { %1485 = vmatmul.mubr.msk.f32.vlgmr.msra.gmra.mxu1 %vm1173_vm8, %v1170_v49 }
 0x4b7   :  { %v1264_v53 = vpop.f32.mrf.mxu1 }
 0x4b8   :  { %v1265_v55 = vadd.f32 %v1325_v51, %v1264_v53 }
 0x4b9   :  { %v1486_v56 = vpop.f32.mrf.mxu1 }
 0x4ba   :  { %1268 = vst [vmem:[#allocation14] sm:$0xff] %v1265_v55 }
 0x4bb   :  { %1629 = shalt.err (!%p1626_p12)
}
 0x4bc   :  { %1278 = dma.vmem_to_hbm [thread:$0]  %s1276_s29, 128, %s2082_s12, [#allocation8]  }
 0x4bd   :  { %1648 = dma.done.wait [#allocation8], 128  }
 0x4be   :  { %1649 = vsyncadd [#allocation8], 4294967168 }
 0x4bf   :  { %1282 = vsyncpa [#allocation7], 1 }
 0x4c0   :  { %1283 = vsyncpa [#allocation10], 1 }
 0x4c1   :  { %1284 = vsyncpa [#allocation13], 1 }
 0x4c2   :  { %1285 = vsyncpa [#allocation8], 1 }

</bundles_post_ra>
